<compile_context>
chip_gen: v5e
topology: v5e:2x2
jax: 0.10.0
libtpu: 0.0.40
codegen_flags: <defaults>
</compile_context>

<pallas_src>
import math

import jax
import jax.numpy as jnp
from jax.experimental import pallas as pl
from jax.experimental.pallas import tpu as pltpu

# ----------------------------- sizes ---------------------------------------
B = 2            # batch
S = 8            # sequence length
D = 128          # hidden size (stand-in for 5120)
FF = 256         # FFN inner size
V = 64           # vocab size of the synthetic embedding table
NUM_CLASSES = 2
LANE = 128       # lane-dense padded classifier width

# -------- packed small-vector slab layout (one DMA instead of ~18) ----------
_VEC_ROW_SPECS = (("ln1_g", D), ("ln1_b", D), ("bqkv", 3 * D), ("bo", D),
                  ("ln2_g", D), ("ln2_b", D), ("b1", FF), ("b2", D))
_VEC_ROWS_PER_MODEL = len(_VEC_ROW_SPECS)        # 8 rows per encoder layer
_ROW_BC = 2 * _VEC_ROWS_PER_MODEL                # classifier bias row (16)
_VEC_ROWS = _ROW_BC + 1                          # 17
_VEC_W = 3 * D                                   # 384 (widest vector = bqkv)


# ----------------------------- kernel helpers -------------------------------
def _layernorm(x, g, b):
    # x: (rows, D) f32; g, b: (1, D) f32
    mu = jnp.mean(x, axis=-1, keepdims=True)
    xc = x - mu
    var = jnp.mean(xc * xc, axis=-1, keepdims=True)
    return xc * jax.lax.rsqrt(var + 1e-5) * g + b


def _encoder_full(x, bias, vec_ref, base, wqkv_ref, wo_ref, w1_ref, w2_ref, Bm, Sm):
    """One pre-LN encoder layer on the collapsed (B*S, D) slab (model1)."""
    Dh = x.shape[-1]
    FFh = w1_ref.shape[-1]

    xn = _layernorm(x, vec_ref[base + 0:base + 1, :Dh],
                    vec_ref[base + 1:base + 2, :Dh])
    # fused QKV: one (B*S, D) @ (D, 3D) bf16 matmul, f32 accumulation
    qkv = (jnp.dot(xn.astype(jnp.bfloat16), wqkv_ref[...],
                   preferred_element_type=jnp.float32)
           + vec_ref[base + 2:base + 3, :3 * Dh])                      # (B*S, 3D)
    q = qkv[:, :Dh].reshape(Bm, Sm, Dh).astype(jnp.bfloat16)
    k = qkv[:, Dh:2 * Dh].reshape(Bm, Sm, Dh).astype(jnp.bfloat16)
    v = qkv[:, 2 * Dh:].reshape(Bm, Sm, Dh).astype(jnp.bfloat16)

    # 1/sqrt(D) already folded into the Q columns of wqkv at init time.
    s = jnp.einsum('bqd,bkd->bqk', q, k,
                   preferred_element_type=jnp.float32)                 # (B, S, S)
    s = s + bias                                                       # key mask
    s = s - jnp.max(s, axis=-1, keepdims=True)
    p = jnp.exp(s)
    p = p * pl.reciprocal(jnp.sum(p, axis=-1, keepdims=True), approx=True)

    a = jnp.einsum('bqk,bkd->bqd', p.astype(jnp.bfloat16), v,
                   preferred_element_type=jnp.float32).reshape(Bm * Sm, Dh)
    x = (x + jnp.dot(a.astype(jnp.bfloat16), wo_ref[...],
                     preferred_element_type=jnp.float32)
         + vec_ref[base + 3:base + 4, :Dh])

    xn = _layernorm(x, vec_ref[base + 4:base + 5, :Dh],
                    vec_ref[base + 5:base + 6, :Dh])
    h = (jnp.dot(xn.astype(jnp.bfloat16), w1_ref[...],
                 preferred_element_type=jnp.float32)
         + vec_ref[base + 6:base + 7, :FFh])
    h = jax.nn.gelu(h, approximate=True)
    x = (x + jnp.dot(h.astype(jnp.bfloat16), w2_ref[...],
                     preferred_element_type=jnp.float32)
         + vec_ref[base + 7:base + 8, :Dh])
    return x


def _encoder_cls(x, vec_ref, base, wqkv_ref, wo_ref, w1_ref, w2_ref, Bm, Sm):
    """Encoder layer (model2, no mask) computing only the CLS row past K/V.

    K/V come from the full slab, so the CLS output is bit-identical to the
    full-sequence layer; rows 1..S-1 of the output are dead and skipped.
    Returns (B, D) f32.
    """
    Dh = x.shape[-1]
    FFh = w1_ref.shape[-1]

    xn = _layernorm(x, vec_ref[base + 0:base + 1, :Dh],
                    vec_ref[base + 1:base + 2, :Dh])                   # (B*S, D)
    xn16 = xn.astype(jnp.bfloat16)

    # K/V for every position (column-sliced wqkv ref -> single (D, 2D) load).
    kv = (jnp.dot(xn16, wqkv_ref[:, Dh:],
                  preferred_element_type=jnp.float32)
          + vec_ref[base + 2:base + 3, Dh:3 * Dh])                     # (B*S, 2D)
    k = kv[:, :Dh].reshape(Bm, Sm, Dh).astype(jnp.bfloat16)
    v = kv[:, Dh:].reshape(Bm, Sm, Dh).astype(jnp.bfloat16)

    # Q only for the CLS row of each batch element.
    xn_cls = xn.reshape(Bm, Sm, Dh)[:, 0, :].astype(jnp.bfloat16)      # (B, D)
    q_cls = (jnp.dot(xn_cls, wqkv_ref[:, :Dh],
                     preferred_element_type=jnp.float32)
             + vec_ref[base + 2:base + 3, :Dh]).astype(jnp.bfloat16)
    q_cls = q_cls.reshape(Bm, 1, Dh)                                   # (B, 1, D)

    s = jnp.einsum('bqd,bkd->bqk', q_cls, k,
                   preferred_element_type=jnp.float32)                 # (B, 1, S)
    s = s - jnp.max(s, axis=-1, keepdims=True)
    p = jnp.exp(s)
    p = p * pl.reciprocal(jnp.sum(p, axis=-1, keepdims=True), approx=True)
    a = jnp.einsum('bqk,bkd->bqd', p.astype(jnp.bfloat16), v,
                   preferred_element_type=jnp.float32).reshape(Bm, Dh)  # (B, D)

    x_cls = x.reshape(Bm, Sm, Dh)[:, 0, :]                              # (B, D)
    x_cls = (x_cls + jnp.dot(a.astype(jnp.bfloat16), wo_ref[...],
                             preferred_element_type=jnp.float32)
             + vec_ref[base + 3:base + 4, :Dh])

    xn2 = _layernorm(x_cls, vec_ref[base + 4:base + 5, :Dh],
                     vec_ref[base + 5:base + 6, :Dh])
    h = (jnp.dot(xn2.astype(jnp.bfloat16), w1_ref[...],
                 preferred_element_type=jnp.float32)
         + vec_ref[base + 6:base + 7, :FFh])
    h = jax.nn.gelu(h, approximate=True)
    x_cls = (x_cls + jnp.dot(h.astype(jnp.bfloat16), w2_ref[...],
                             preferred_element_type=jnp.float32)
             + vec_ref[base + 7:base + 8, :Dh])
    return x_cls


# ----------------------------- fused kernel ---------------------------------
def fused_forward_kernel(h_ref, bias_ref, vec_ref,
                         wqkv1_ref, wo1_ref, w11_ref, w21_ref,
                         wqkv2_ref, wo2_ref, w12_ref, w22_ref,
                         wc_ref, out_ref):
    Bm, _, Sm = bias_ref.shape
    lane = wc_ref.shape[-1]

    x = h_ref[...]                      # (B*S, D) f32 residual stream
    bias = bias_ref[...]                # (B, 1, S) additive key-mask bias

    # model1: masked self-attention encoder layer (full sequence).
    x = _encoder_full(x, bias, vec_ref, 0,
                      wqkv1_ref, wo1_ref, w11_ref, w21_ref, Bm, Sm)
    # model2: no mask (HF default all-ones); only the CLS row feeds the
    # classifier so its post-attention path is computed for row 0 only.
    x_cls = _encoder_cls(x, vec_ref, _VEC_ROWS_PER_MODEL,
                         wqkv2_ref, wo2_ref, w12_ref, w22_ref, Bm, Sm)

    # classifier, lane-dense padded output (B, 128); sliced to 2 in the wrapper
    logits = (jnp.dot(x_cls.astype(jnp.bfloat16), wc_ref[...],
                      preferred_element_type=jnp.float32)
              + vec_ref[_ROW_BC:_ROW_BC + 1, :lane])
    out_ref[...] = logits


# ----------------------------- wrapper ---------------------------------------
def _full_spec(arr):
    nd = arr.ndim
    return pl.BlockSpec(arr.shape, lambda i, _nd=nd: (0,) * _nd)


def stacked_model_forward(input_ids, attention_mask, params):
    Bm, Sm = input_ids.shape
    Dh = params["embed"].shape[-1]

    # token embedding gather stays in plain JAX (data-dependent gather);
    # batch collapsed to a single (B*S, D) slab for the kernel.
    h = jnp.take(params["embed"], input_ids, axis=0).reshape(Bm * Sm, Dh)
    # additive key-mask bias, computed once: 0 where keep, -1e9 where masked
    bias = ((attention_mask.astype(jnp.float32) - 1.0) * 1e9).reshape(Bm, 1, Sm)

    m1, m2 = params["m1"], params["m2"]
    inputs = [h, bias, params["vec"],
              m1["wqkv"], m1["wo"], m1["w1"], m1["w2"],
              m2["wqkv"], m2["wo"], m2["w1"], m2["w2"],
              params["wc_pad"]]

    lane = params["wc_pad"].shape[-1]
    logits_pad = pl.pallas_call(
        fused_forward_kernel,
        out_shape=jax.ShapeDtypeStruct((Bm, lane), jnp.float32),
        grid=(1,),                               # single step: no per-step loop overhead
        in_specs=[_full_spec(a) for a in inputs],
        out_specs=pl.BlockSpec((Bm, lane), lambda i: (0, 0)),
        compiler_params=pltpu.CompilerParams(
            dimension_semantics=("arbitrary",)),
    )(*inputs)

    return logits_pad[:, :NUM_CLASSES]


# ----------------------------- params ---------------------------------------
def init_layer_params(key):
    ks = jax.random.split(key, 6)
    std = 0.02
    scale = 1.0 / math.sqrt(D)         # attention scale folded into Q columns
    wq = std * jax.random.normal(ks[0], (D, D), jnp.float32) * scale
    wk = std * jax.random.normal(ks[1], (D, D), jnp.float32)
    wv = std * jax.random.normal(ks[2], (D, D), jnp.float32)
    return dict(
        wqkv=jnp.concatenate([wq, wk, wv], axis=1).astype(jnp.bfloat16),   # (D, 3D)
        wo=(std * jax.random.normal(ks[3], (D, D), jnp.float32)).astype(jnp.bfloat16),
        w1=(std * jax.random.normal(ks[4], (D, FF), jnp.float32)).astype(jnp.bfloat16),
        w2=(std * jax.random.normal(ks[5], (FF, D), jnp.float32)).astype(jnp.bfloat16),
        ln1_g=jnp.ones((D,), jnp.float32), ln1_b=jnp.zeros((D,), jnp.float32),
        bqkv=jnp.zeros((3 * D,), jnp.float32), bo=jnp.zeros((D,), jnp.float32),
        ln2_g=jnp.ones((D,), jnp.float32), ln2_b=jnp.zeros((D,), jnp.float32),
        b1=jnp.zeros((FF,), jnp.float32), b2=jnp.zeros((D,), jnp.float32),
    )


def _pack_vectors(m1, m2, bc_pad):
    slab = jnp.zeros((_VEC_ROWS, _VEC_W), jnp.float32)
    for base, m in ((0, m1), (_VEC_ROWS_PER_MODEL, m2)):
        for r, (k, w) in enumerate(_VEC_ROW_SPECS):
            slab = slab.at[base + r, :w].set(m[k])
    return slab.at[_ROW_BC, :bc_pad.shape[0]].set(bc_pad)


def init_params(key):
    k_emb, k_m1, k_m2, k_c = jax.random.split(key, 4)
    m1 = init_layer_params(k_m1)
    m2 = init_layer_params(k_m2)
    wc = 0.02 * jax.random.normal(k_c, (D, NUM_CLASSES), jnp.float32)
    # lane-dense padded classifier weight: columns >= NUM_CLASSES are zero
    wc_pad = (jnp.zeros((D, LANE), jnp.float32)
              .at[:, :NUM_CLASSES].set(wc)).astype(jnp.bfloat16)
    bc_pad = jnp.zeros((LANE,), jnp.float32)     # classifier bias (padded row)
    mats = lambda m: {k: m[k] for k in ("wqkv", "wo", "w1", "w2")}
    return dict(
        embed=0.02 * jax.random.normal(k_emb, (V, D), jnp.float32),
        m1=mats(m1), m2=mats(m2),
        wc_pad=wc_pad,
        vec=_pack_vectors(m1, m2, bc_pad),
    )


if __name__ == "__main__":
    key = jax.random.PRNGKey(0)
    k_ids, k_params = jax.random.split(key)
    input_ids = jax.random.randint(k_ids, (B, S), 0, V, dtype=jnp.int32)
    # second sequence has 2 padded positions masked out
    attention_mask = (jnp.arange(S)[None, :]
                      < jnp.array([[S], [S - 2]])).astype(jnp.float32)

    params = init_params(k_params)
    fwd = jax.jit(stacked_model_forward)
    logits = fwd(input_ids, attention_mask, params)
    jax.block_until_ready(logits)
    assert logits.shape == (B, NUM_CLASSES) and logits.dtype == jnp.float32
    print("KERNEL_OK")
</pallas_src>

<mosaic_0001>
module attributes {stable_mosaic.version = 11 : i64} {
  func.func @fused_forward_kernel(%arg0: i32, %arg1: memref<16x128xf32, #tpu.memory_space<vmem>>, %arg2: memref<2x1x8xf32, #tpu.memory_space<vmem>>, %arg3: memref<17x384xf32, #tpu.memory_space<vmem>>, %arg4: memref<128x384xbf16, #tpu.memory_space<vmem>>, %arg5: memref<128x128xbf16, #tpu.memory_space<vmem>>, %arg6: memref<128x256xbf16, #tpu.memory_space<vmem>>, %arg7: memref<256x128xbf16, #tpu.memory_space<vmem>>, %arg8: memref<128x384xbf16, #tpu.memory_space<vmem>>, %arg9: memref<128x128xbf16, #tpu.memory_space<vmem>>, %arg10: memref<128x256xbf16, #tpu.memory_space<vmem>>, %arg11: memref<256x128xbf16, #tpu.memory_space<vmem>>, %arg12: memref<128x128xbf16, #tpu.memory_space<vmem>>, %arg13: memref<2x128xf32, #tpu.memory_space<vmem>>) attributes {dimension_semantics = [#tpu.dimension_semantics<arbitrary>], iteration_bounds = array<i64: 1>, scalar_prefetch = 0 : i64, scratch_operands = 0 : i64, tpu.core_type = #tpu.core_type<tc>, window_params = [{pipeline_mode = #tpu.pipeline_mode<synchronous>, transform_indices = @transform_0, window_bounds = array<i64: 16, 128>}, {pipeline_mode = #tpu.pipeline_mode<synchronous>, transform_indices = @transform_1, window_bounds = array<i64: 2, 1, 8>}, {pipeline_mode = #tpu.pipeline_mode<synchronous>, transform_indices = @transform_2, window_bounds = array<i64: 17, 384>}, {pipeline_mode = #tpu.pipeline_mode<synchronous>, transform_indices = @transform_3, window_bounds = array<i64: 128, 384>}, {pipeline_mode = #tpu.pipeline_mode<synchronous>, transform_indices = @transform_4, window_bounds = array<i64: 128, 128>}, {pipeline_mode = #tpu.pipeline_mode<synchronous>, transform_indices = @transform_5, window_bounds = array<i64: 128, 256>}, {pipeline_mode = #tpu.pipeline_mode<synchronous>, transform_indices = @transform_6, window_bounds = array<i64: 256, 128>}, {pipeline_mode = #tpu.pipeline_mode<synchronous>, transform_indices = @transform_7, window_bounds = array<i64: 128, 384>}, {pipeline_mode = #tpu.pipeline_mode<synchronous>, transform_indices = @transform_8, window_bounds = array<i64: 128, 128>}, {pipeline_mode = #tpu.pipeline_mode<synchronous>, transform_indices = @transform_9, window_bounds = array<i64: 128, 256>}, {pipeline_mode = #tpu.pipeline_mode<synchronous>, transform_indices = @transform_10, window_bounds = array<i64: 256, 128>}, {pipeline_mode = #tpu.pipeline_mode<synchronous>, transform_indices = @transform_11, window_bounds = array<i64: 128, 128>}, {pipeline_mode = #tpu.pipeline_mode<synchronous>, transform_indices = @transform_12, window_bounds = array<i64: 2, 128>}]} {
    %c0 = arith.constant 0 : index
    %c0_0 = arith.constant 0 : index
    %0 = vector.load %arg1[%c0, %c0_0] : memref<16x128xf32, #tpu.memory_space<vmem>>, vector<16x128xf32>
    %c0_1 = arith.constant 0 : index
    %c0_2 = arith.constant 0 : index
    %c0_3 = arith.constant 0 : index
    %1 = vector.load %arg2[%c0_1, %c0_2, %c0_3] : memref<2x1x8xf32, #tpu.memory_space<vmem>>, vector<2x1x8xf32>
    %c0_4 = arith.constant 0 : index
    %c0_5 = arith.constant 0 : index
    %2 = vector.load %arg3[%c0_4, %c0_5] : memref<17x384xf32, #tpu.memory_space<vmem>>, vector<1x128xf32>
    %c1 = arith.constant 1 : index
    %c0_6 = arith.constant 0 : index
    %3 = vector.load %arg3[%c1, %c0_6] : memref<17x384xf32, #tpu.memory_space<vmem>>, vector<1x128xf32>
    %cst = arith.constant dense<0.000000e+00> : vector<16xf32>
    %4 = vector.multi_reduction <add>, %0, %cst [1] : vector<16x128xf32> to vector<16xf32>
    %5 = vector.shape_cast %4 : vector<16xf32> to vector<16x1xf32>
    %cst_7 = arith.constant 1.280000e+02 : f32
    %6 = vector.broadcast %cst_7 : f32 to vector<16x1xf32>
    %7 = arith.divf %5, %6 : vector<16x1xf32>
    %8 = vector.broadcast %7 : vector<16x1xf32> to vector<16x128xf32>
    %9 = arith.subf %0, %8 : vector<16x128xf32>
    %10 = arith.mulf %9, %9 : vector<16x128xf32>
    %cst_8 = arith.constant dense<0.000000e+00> : vector<16xf32>
    %11 = vector.multi_reduction <add>, %10, %cst_8 [1] : vector<16x128xf32> to vector<16xf32>
    %12 = vector.shape_cast %11 : vector<16xf32> to vector<16x1xf32>
    %cst_9 = arith.constant 1.280000e+02 : f32
    %13 = vector.broadcast %cst_9 : f32 to vector<16x1xf32>
    %14 = arith.divf %12, %13 : vector<16x1xf32>
    %cst_10 = arith.constant 9.99999974E-6 : f32
    %15 = vector.broadcast %cst_10 : f32 to vector<16x1xf32>
    %16 = arith.addf %14, %15 : vector<16x1xf32>
    %17 = math.rsqrt %16 : vector<16x1xf32>
    %18 = vector.broadcast %17 : vector<16x1xf32> to vector<16x128xf32>
    %19 = arith.mulf %9, %18 : vector<16x128xf32>
    %20 = vector.broadcast %2 : vector<1x128xf32> to vector<16x128xf32>
    %21 = arith.mulf %19, %20 : vector<16x128xf32>
    %22 = vector.broadcast %3 : vector<1x128xf32> to vector<16x128xf32>
    %23 = arith.addf %21, %22 : vector<16x128xf32>
    %24 = arith.truncf %23 : vector<16x128xf32> to vector<16x128xbf16>
    %c0_11 = arith.constant 0 : index
    %c0_12 = arith.constant 0 : index
    %25 = vector.load %arg4[%c0_11, %c0_12] : memref<128x384xbf16, #tpu.memory_space<vmem>>, vector<128x384xbf16>
    %cst_13 = arith.constant dense<0.000000e+00> : vector<16x384xf32>
    %26 = tpu.matmul %24, %25, %cst_13 {dimension_numbers = #tpu.dot_dimension_numbers<[1], [0], [0], [1], [0, 0, 1, 1], [], []>} : vector<16x128xbf16>, vector<128x384xbf16>, vector<16x384xf32> -> vector<16x384xf32>
    %c2 = arith.constant 2 : index
    %c0_14 = arith.constant 0 : index
    %27 = vector.load %arg3[%c2, %c0_14] : memref<17x384xf32, #tpu.memory_space<vmem>>, vector<1x384xf32>
    %28 = vector.broadcast %27 : vector<1x384xf32> to vector<16x384xf32>
    %29 = arith.addf %26, %28 : vector<16x384xf32>
    %30 = vector.extract_strided_slice %29 {offsets = [0, 0], sizes = [16, 128], strides = [1, 1]} : vector<16x384xf32> to vector<16x128xf32>
    %31 = vector.shape_cast %30 : vector<16x128xf32> to vector<2x8x128xf32>
    %32 = arith.truncf %31 : vector<2x8x128xf32> to vector<2x8x128xbf16>
    %33 = vector.extract_strided_slice %29 {offsets = [0, 128], sizes = [16, 128], strides = [1, 1]} : vector<16x384xf32> to vector<16x128xf32>
    %34 = vector.shape_cast %33 : vector<16x128xf32> to vector<2x8x128xf32>
    %35 = arith.truncf %34 : vector<2x8x128xf32> to vector<2x8x128xbf16>
    %36 = vector.extract_strided_slice %29 {offsets = [0, 256], sizes = [16, 128], strides = [1, 1]} : vector<16x384xf32> to vector<16x128xf32>
    %37 = vector.shape_cast %36 : vector<16x128xf32> to vector<2x8x128xf32>
    %38 = arith.truncf %37 : vector<2x8x128xf32> to vector<2x8x128xbf16>
    "tpu.trace_start"() <{level = 10 : i32, message = "bqd,bkd->bqk"}> : () -> ()
    %cst_15 = arith.constant dense<0.000000e+00> : vector<2x8x8xf32>
    %39 = tpu.matmul %32, %35, %cst_15 {dimension_numbers = #tpu.dot_dimension_numbers<[2], [2], [1], [1], [0, 0, 0, 1, 1, 1], [0], [0]>} : vector<2x8x128xbf16>, vector<2x8x128xbf16>, vector<2x8x8xf32> -> vector<2x8x8xf32>
    "tpu.trace_stop"() : () -> ()
    %40 = vector.broadcast %1 : vector<2x1x8xf32> to vector<2x8x8xf32>
    %41 = arith.addf %39, %40 : vector<2x8x8xf32>
    %cst_16 = arith.constant dense<0xFF800000> : vector<2x8xf32>
    %42 = vector.multi_reduction <maximumf>, %41, %cst_16 [2] : vector<2x8x8xf32> to vector<2x8xf32>
    %43 = vector.shape_cast %42 : vector<2x8xf32> to vector<2x8x1xf32>
    %44 = vector.broadcast %43 : vector<2x8x1xf32> to vector<2x8x8xf32>
    %45 = arith.subf %41, %44 : vector<2x8x8xf32>
    %46 = math.exp %45 : vector<2x8x8xf32>
    %cst_17 = arith.constant dense<0.000000e+00> : vector<2x8xf32>
    %47 = vector.multi_reduction <add>, %46, %cst_17 [2] : vector<2x8x8xf32> to vector<2x8xf32>
    %48 = vector.shape_cast %47 : vector<2x8xf32> to vector<2x8x1xf32>
    %49 = tpu.reciprocal %48 {approx = true} : vector<2x8x1xf32> -> vector<2x8x1xf32>
    %50 = vector.broadcast %49 : vector<2x8x1xf32> to vector<2x8x8xf32>
    %51 = arith.mulf %46, %50 : vector<2x8x8xf32>
    %52 = arith.truncf %51 : vector<2x8x8xf32> to vector<2x8x8xbf16>
    "tpu.trace_start"() <{level = 10 : i32, message = "bqk,bkd->bqd"}> : () -> ()
    %cst_18 = arith.constant dense<0.000000e+00> : vector<2x8x128xf32>
    %53 = tpu.matmul %52, %38, %cst_18 {dimension_numbers = #tpu.dot_dimension_numbers<[2], [1], [1], [2], [0, 0, 0, 1, 1, 2], [0], [0]>} : vector<2x8x8xbf16>, vector<2x8x128xbf16>, vector<2x8x128xf32> -> vector<2x8x128xf32>
    "tpu.trace_stop"() : () -> ()
    %54 = vector.shape_cast %53 : vector<2x8x128xf32> to vector<16x128xf32>
    %55 = arith.truncf %54 : vector<16x128xf32> to vector<16x128xbf16>
    %c0_19 = arith.constant 0 : index
    %c0_20 = arith.constant 0 : index
    %56 = vector.load %arg5[%c0_19, %c0_20] : memref<128x128xbf16, #tpu.memory_space<vmem>>, vector<128x128xbf16>
    %cst_21 = arith.constant dense<0.000000e+00> : vector<16x128xf32>
    %57 = tpu.matmul %55, %56, %cst_21 {dimension_numbers = #tpu.dot_dimension_numbers<[1], [0], [0], [1], [0, 0, 1, 1], [], []>} : vector<16x128xbf16>, vector<128x128xbf16>, vector<16x128xf32> -> vector<16x128xf32>
    %58 = arith.addf %0, %57 : vector<16x128xf32>
    %c3 = arith.constant 3 : index
    %c0_22 = arith.constant 0 : index
    %59 = vector.load %arg3[%c3, %c0_22] : memref<17x384xf32, #tpu.memory_space<vmem>>, vector<1x128xf32>
    %60 = vector.broadcast %59 : vector<1x128xf32> to vector<16x128xf32>
    %61 = arith.addf %58, %60 : vector<16x128xf32>
    %c4 = arith.constant 4 : index
    %c0_23 = arith.constant 0 : index
    %62 = vector.load %arg3[%c4, %c0_23] : memref<17x384xf32, #tpu.memory_space<vmem>>, vector<1x128xf32>
    %c5 = arith.constant 5 : index
    %c0_24 = arith.constant 0 : index
    %63 = vector.load %arg3[%c5, %c0_24] : memref<17x384xf32, #tpu.memory_space<vmem>>, vector<1x128xf32>
    %cst_25 = arith.constant dense<0.000000e+00> : vector<16xf32>
    %64 = vector.multi_reduction <add>, %61, %cst_25 [1] : vector<16x128xf32> to vector<16xf32>
    %65 = vector.shape_cast %64 : vector<16xf32> to vector<16x1xf32>
    %cst_26 = arith.constant 1.280000e+02 : f32
    %66 = vector.broadcast %cst_26 : f32 to vector<16x1xf32>
    %67 = arith.divf %65, %66 : vector<16x1xf32>
    %68 = vector.broadcast %67 : vector<16x1xf32> to vector<16x128xf32>
    %69 = arith.subf %61, %68 : vector<16x128xf32>
    %70 = arith.mulf %69, %69 : vector<16x128xf32>
    %cst_27 = arith.constant dense<0.000000e+00> : vector<16xf32>
    %71 = vector.multi_reduction <add>, %70, %cst_27 [1] : vector<16x128xf32> to vector<16xf32>
    %72 = vector.shape_cast %71 : vector<16xf32> to vector<16x1xf32>
    %cst_28 = arith.constant 1.280000e+02 : f32
    %73 = vector.broadcast %cst_28 : f32 to vector<16x1xf32>
    %74 = arith.divf %72, %73 : vector<16x1xf32>
    %cst_29 = arith.constant 9.99999974E-6 : f32
    %75 = vector.broadcast %cst_29 : f32 to vector<16x1xf32>
    %76 = arith.addf %74, %75 : vector<16x1xf32>
    %77 = math.rsqrt %76 : vector<16x1xf32>
    %78 = vector.broadcast %77 : vector<16x1xf32> to vector<16x128xf32>
    %79 = arith.mulf %69, %78 : vector<16x128xf32>
    %80 = vector.broadcast %62 : vector<1x128xf32> to vector<16x128xf32>
    %81 = arith.mulf %79, %80 : vector<16x128xf32>
    %82 = vector.broadcast %63 : vector<1x128xf32> to vector<16x128xf32>
    %83 = arith.addf %81, %82 : vector<16x128xf32>
    %84 = arith.truncf %83 : vector<16x128xf32> to vector<16x128xbf16>
    %c0_30 = arith.constant 0 : index
    %c0_31 = arith.constant 0 : index
    %85 = vector.load %arg6[%c0_30, %c0_31] : memref<128x256xbf16, #tpu.memory_space<vmem>>, vector<128x256xbf16>
    %cst_32 = arith.constant dense<0.000000e+00> : vector<16x256xf32>
    %86 = tpu.matmul %84, %85, %cst_32 {dimension_numbers = #tpu.dot_dimension_numbers<[1], [0], [0], [1], [0, 0, 1, 1], [], []>} : vector<16x128xbf16>, vector<128x256xbf16>, vector<16x256xf32> -> vector<16x256xf32>
    %c6 = arith.constant 6 : index
    %c0_33 = arith.constant 0 : index
    %87 = vector.load %arg3[%c6, %c0_33] : memref<17x384xf32, #tpu.memory_space<vmem>>, vector<1x256xf32>
    %88 = vector.broadcast %87 : vector<1x256xf32> to vector<16x256xf32>
    %89 = arith.addf %86, %88 : vector<16x256xf32>
    %90 = arith.mulf %89, %89 : vector<16x256xf32>
    %91 = arith.mulf %89, %90 : vector<16x256xf32>
    %cst_34 = arith.constant 4.471500e-02 : f32
    %92 = vector.broadcast %cst_34 : f32 to vector<16x256xf32>
    %93 = arith.mulf %92, %91 : vector<16x256xf32>
    %94 = arith.addf %89, %93 : vector<16x256xf32>
    %cst_35 = arith.constant 0.797884583 : f32
    %95 = vector.broadcast %cst_35 : f32 to vector<16x256xf32>
    %96 = arith.mulf %95, %94 : vector<16x256xf32>
    %97 = math.tanh %96 : vector<16x256xf32>
    %cst_36 = arith.constant 1.000000e+00 : f32
    %98 = vector.broadcast %cst_36 : f32 to vector<16x256xf32>
    %99 = arith.addf %98, %97 : vector<16x256xf32>
    %cst_37 = arith.constant 5.000000e-01 : f32
    %100 = vector.broadcast %cst_37 : f32 to vector<16x256xf32>
    %101 = arith.mulf %100, %99 : vector<16x256xf32>
    %102 = arith.mulf %89, %101 : vector<16x256xf32>
    %103 = arith.truncf %102 : vector<16x256xf32> to vector<16x256xbf16>
    %c0_38 = arith.constant 0 : index
    %c0_39 = arith.constant 0 : index
    %104 = vector.load %arg7[%c0_38, %c0_39] : memref<256x128xbf16, #tpu.memory_space<vmem>>, vector<256x128xbf16>
    %cst_40 = arith.constant dense<0.000000e+00> : vector<16x128xf32>
    %105 = tpu.matmul %103, %104, %cst_40 {dimension_numbers = #tpu.dot_dimension_numbers<[1], [0], [0], [1], [0, 0, 1, 1], [], []>} : vector<16x256xbf16>, vector<256x128xbf16>, vector<16x128xf32> -> vector<16x128xf32>
    %106 = arith.addf %61, %105 : vector<16x128xf32>
    %c7 = arith.constant 7 : index
    %c0_41 = arith.constant 0 : index
    %107 = vector.load %arg3[%c7, %c0_41] : memref<17x384xf32, #tpu.memory_space<vmem>>, vector<1x128xf32>
    %108 = vector.broadcast %107 : vector<1x128xf32> to vector<16x128xf32>
    %109 = arith.addf %106, %108 : vector<16x128xf32>
    %c8 = arith.constant 8 : index
    %c0_42 = arith.constant 0 : index
    %110 = vector.load %arg3[%c8, %c0_42] : memref<17x384xf32, #tpu.memory_space<vmem>>, vector<1x128xf32>
    %c9 = arith.constant 9 : index
    %c0_43 = arith.constant 0 : index
    %111 = vector.load %arg3[%c9, %c0_43] : memref<17x384xf32, #tpu.memory_space<vmem>>, vector<1x128xf32>
    %cst_44 = arith.constant dense<0.000000e+00> : vector<16xf32>
    %112 = vector.multi_reduction <add>, %109, %cst_44 [1] : vector<16x128xf32> to vector<16xf32>
    %113 = vector.shape_cast %112 : vector<16xf32> to vector<16x1xf32>
    %cst_45 = arith.constant 1.280000e+02 : f32
    %114 = vector.broadcast %cst_45 : f32 to vector<16x1xf32>
    %115 = arith.divf %113, %114 : vector<16x1xf32>
    %116 = vector.broadcast %115 : vector<16x1xf32> to vector<16x128xf32>
    %117 = arith.subf %109, %116 : vector<16x128xf32>
    %118 = arith.mulf %117, %117 : vector<16x128xf32>
    %cst_46 = arith.constant dense<0.000000e+00> : vector<16xf32>
    %119 = vector.multi_reduction <add>, %118, %cst_46 [1] : vector<16x128xf32> to vector<16xf32>
    %120 = vector.shape_cast %119 : vector<16xf32> to vector<16x1xf32>
    %cst_47 = arith.constant 1.280000e+02 : f32
    %121 = vector.broadcast %cst_47 : f32 to vector<16x1xf32>
    %122 = arith.divf %120, %121 : vector<16x1xf32>
    %cst_48 = arith.constant 9.99999974E-6 : f32
    %123 = vector.broadcast %cst_48 : f32 to vector<16x1xf32>
    %124 = arith.addf %122, %123 : vector<16x1xf32>
    %125 = math.rsqrt %124 : vector<16x1xf32>
    %126 = vector.broadcast %125 : vector<16x1xf32> to vector<16x128xf32>
    %127 = arith.mulf %117, %126 : vector<16x128xf32>
    %128 = vector.broadcast %110 : vector<1x128xf32> to vector<16x128xf32>
    %129 = arith.mulf %127, %128 : vector<16x128xf32>
    %130 = vector.broadcast %111 : vector<1x128xf32> to vector<16x128xf32>
    %131 = arith.addf %129, %130 : vector<16x128xf32>
    %132 = arith.truncf %131 : vector<16x128xf32> to vector<16x128xbf16>
    %c0_49 = arith.constant 0 : index
    %c128 = arith.constant 128 : index
    %133 = vector.load %arg8[%c0_49, %c128] : memref<128x384xbf16, #tpu.memory_space<vmem>>, vector<128x256xbf16>
    %cst_50 = arith.constant dense<0.000000e+00> : vector<16x256xf32>
    %134 = tpu.matmul %132, %133, %cst_50 {dimension_numbers = #tpu.dot_dimension_numbers<[1], [0], [0], [1], [0, 0, 1, 1], [], []>} : vector<16x128xbf16>, vector<128x256xbf16>, vector<16x256xf32> -> vector<16x256xf32>
    %c10 = arith.constant 10 : index
    %c128_51 = arith.constant 128 : index
    %135 = vector.load %arg3[%c10, %c128_51] : memref<17x384xf32, #tpu.memory_space<vmem>>, vector<1x256xf32>
    %136 = vector.broadcast %135 : vector<1x256xf32> to vector<16x256xf32>
    %137 = arith.addf %134, %136 : vector<16x256xf32>
    %138 = vector.extract_strided_slice %137 {offsets = [0, 0], sizes = [16, 128], strides = [1, 1]} : vector<16x256xf32> to vector<16x128xf32>
    %139 = vector.shape_cast %138 : vector<16x128xf32> to vector<2x8x128xf32>
    %140 = arith.truncf %139 : vector<2x8x128xf32> to vector<2x8x128xbf16>
    %141 = vector.extract_strided_slice %137 {offsets = [0, 128], sizes = [16, 128], strides = [1, 1]} : vector<16x256xf32> to vector<16x128xf32>
    %142 = vector.shape_cast %141 : vector<16x128xf32> to vector<2x8x128xf32>
    %143 = arith.truncf %142 : vector<2x8x128xf32> to vector<2x8x128xbf16>
    %144 = vector.shape_cast %131 : vector<16x128xf32> to vector<2x8x128xf32>
    %145 = vector.extract_strided_slice %144 {offsets = [0, 0, 0], sizes = [2, 1, 128], strides = [1, 1, 1]} : vector<2x8x128xf32> to vector<2x1x128xf32>
    %146 = vector.shape_cast %145 : vector<2x1x128xf32> to vector<2x128xf32>
    %147 = arith.truncf %146 : vector<2x128xf32> to vector<2x128xbf16>
    %c0_52 = arith.constant 0 : index
    %c0_53 = arith.constant 0 : index
    %148 = vector.load %arg8[%c0_52, %c0_53] : memref<128x384xbf16, #tpu.memory_space<vmem>>, vector<128x128xbf16>
    %cst_54 = arith.constant dense<0.000000e+00> : vector<2x128xf32>
    %149 = tpu.matmul %147, %148, %cst_54 {dimension_numbers = #tpu.dot_dimension_numbers<[1], [0], [0], [1], [0, 0, 1, 1], [], []>} : vector<2x128xbf16>, vector<128x128xbf16>, vector<2x128xf32> -> vector<2x128xf32>
    %c10_55 = arith.constant 10 : index
    %c0_56 = arith.constant 0 : index
    %150 = vector.load %arg3[%c10_55, %c0_56] : memref<17x384xf32, #tpu.memory_space<vmem>>, vector<1x128xf32>
    %151 = vector.broadcast %150 : vector<1x128xf32> to vector<2x128xf32>
    %152 = arith.addf %149, %151 : vector<2x128xf32>
    %153 = arith.truncf %152 : vector<2x128xf32> to vector<2x128xbf16>
    %154 = vector.shape_cast %153 : vector<2x128xbf16> to vector<2x1x128xbf16>
    "tpu.trace_start"() <{level = 10 : i32, message = "bqd,bkd->bqk"}> : () -> ()
    %cst_57 = arith.constant dense<0.000000e+00> : vector<2x1x8xf32>
    %155 = tpu.matmul %154, %140, %cst_57 {dimension_numbers = #tpu.dot_dimension_numbers<[2], [2], [1], [1], [0, 0, 0, 1, 1, 1], [0], [0]>} : vector<2x1x128xbf16>, vector<2x8x128xbf16>, vector<2x1x8xf32> -> vector<2x1x8xf32>
    "tpu.trace_stop"() : () -> ()
    %cst_58 = arith.constant dense<0xFF800000> : vector<2x1xf32>
    %156 = vector.multi_reduction <maximumf>, %155, %cst_58 [2] : vector<2x1x8xf32> to vector<2x1xf32>
    %157 = vector.shape_cast %156 : vector<2x1xf32> to vector<2x1x1xf32>
    %158 = vector.broadcast %157 : vector<2x1x1xf32> to vector<2x1x8xf32>
    %159 = arith.subf %155, %158 : vector<2x1x8xf32>
    %160 = math.exp %159 : vector<2x1x8xf32>
    %cst_59 = arith.constant dense<0.000000e+00> : vector<2x1xf32>
    %161 = vector.multi_reduction <add>, %160, %cst_59 [2] : vector<2x1x8xf32> to vector<2x1xf32>
    %162 = vector.shape_cast %161 : vector<2x1xf32> to vector<2x1x1xf32>
    %163 = tpu.reciprocal %162 {approx = true} : vector<2x1x1xf32> -> vector<2x1x1xf32>
    %164 = vector.broadcast %163 : vector<2x1x1xf32> to vector<2x1x8xf32>
    %165 = arith.mulf %160, %164 : vector<2x1x8xf32>
    %166 = arith.truncf %165 : vector<2x1x8xf32> to vector<2x1x8xbf16>
    "tpu.trace_start"() <{level = 10 : i32, message = "bqk,bkd->bqd"}> : () -> ()
    %cst_60 = arith.constant dense<0.000000e+00> : vector<2x1x128xf32>
    %167 = tpu.matmul %166, %143, %cst_60 {dimension_numbers = #tpu.dot_dimension_numbers<[2], [1], [1], [2], [0, 0, 0, 1, 1, 2], [0], [0]>} : vector<2x1x8xbf16>, vector<2x8x128xbf16>, vector<2x1x128xf32> -> vector<2x1x128xf32>
    "tpu.trace_stop"() : () -> ()
    %168 = vector.shape_cast %167 : vector<2x1x128xf32> to vector<2x128xf32>
    %169 = vector.shape_cast %109 : vector<16x128xf32> to vector<2x8x128xf32>
    %170 = vector.extract_strided_slice %169 {offsets = [0, 0, 0], sizes = [2, 1, 128], strides = [1, 1, 1]} : vector<2x8x128xf32> to vector<2x1x128xf32>
    %171 = vector.shape_cast %170 : vector<2x1x128xf32> to vector<2x128xf32>
    %172 = arith.truncf %168 : vector<2x128xf32> to vector<2x128xbf16>
    %c0_61 = arith.constant 0 : index
    %c0_62 = arith.constant 0 : index
    %173 = vector.load %arg9[%c0_61, %c0_62] : memref<128x128xbf16, #tpu.memory_space<vmem>>, vector<128x128xbf16>
    %cst_63 = arith.constant dense<0.000000e+00> : vector<2x128xf32>
    %174 = tpu.matmul %172, %173, %cst_63 {dimension_numbers = #tpu.dot_dimension_numbers<[1], [0], [0], [1], [0, 0, 1, 1], [], []>} : vector<2x128xbf16>, vector<128x128xbf16>, vector<2x128xf32> -> vector<2x128xf32>
    %175 = arith.addf %171, %174 : vector<2x128xf32>
    %c11 = arith.constant 11 : index
    %c0_64 = arith.constant 0 : index
    %176 = vector.load %arg3[%c11, %c0_64] : memref<17x384xf32, #tpu.memory_space<vmem>>, vector<1x128xf32>
    %177 = vector.broadcast %176 : vector<1x128xf32> to vector<2x128xf32>
    %178 = arith.addf %175, %177 : vector<2x128xf32>
    %c12 = arith.constant 12 : index
    %c0_65 = arith.constant 0 : index
    %179 = vector.load %arg3[%c12, %c0_65] : memref<17x384xf32, #tpu.memory_space<vmem>>, vector<1x128xf32>
    %c13 = arith.constant 13 : index
    %c0_66 = arith.constant 0 : index
    %180 = vector.load %arg3[%c13, %c0_66] : memref<17x384xf32, #tpu.memory_space<vmem>>, vector<1x128xf32>
    %cst_67 = arith.constant dense<0.000000e+00> : vector<2xf32>
    %181 = vector.multi_reduction <add>, %178, %cst_67 [1] : vector<2x128xf32> to vector<2xf32>
    %182 = vector.shape_cast %181 : vector<2xf32> to vector<2x1xf32>
    %cst_68 = arith.constant 1.280000e+02 : f32
    %183 = vector.broadcast %cst_68 : f32 to vector<2x1xf32>
    %184 = arith.divf %182, %183 : vector<2x1xf32>
    %185 = vector.broadcast %184 : vector<2x1xf32> to vector<2x128xf32>
    %186 = arith.subf %178, %185 : vector<2x128xf32>
    %187 = arith.mulf %186, %186 : vector<2x128xf32>
    %cst_69 = arith.constant dense<0.000000e+00> : vector<2xf32>
    %188 = vector.multi_reduction <add>, %187, %cst_69 [1] : vector<2x128xf32> to vector<2xf32>
    %189 = vector.shape_cast %188 : vector<2xf32> to vector<2x1xf32>
    %cst_70 = arith.constant 1.280000e+02 : f32
    %190 = vector.broadcast %cst_70 : f32 to vector<2x1xf32>
    %191 = arith.divf %189, %190 : vector<2x1xf32>
    %cst_71 = arith.constant 9.99999974E-6 : f32
    %192 = vector.broadcast %cst_71 : f32 to vector<2x1xf32>
    %193 = arith.addf %191, %192 : vector<2x1xf32>
    %194 = math.rsqrt %193 : vector<2x1xf32>
    %195 = vector.broadcast %194 : vector<2x1xf32> to vector<2x128xf32>
    %196 = arith.mulf %186, %195 : vector<2x128xf32>
    %197 = vector.broadcast %179 : vector<1x128xf32> to vector<2x128xf32>
    %198 = arith.mulf %196, %197 : vector<2x128xf32>
    %199 = vector.broadcast %180 : vector<1x128xf32> to vector<2x128xf32>
    %200 = arith.addf %198, %199 : vector<2x128xf32>
    %201 = arith.truncf %200 : vector<2x128xf32> to vector<2x128xbf16>
    %c0_72 = arith.constant 0 : index
    %c0_73 = arith.constant 0 : index
    %202 = vector.load %arg10[%c0_72, %c0_73] : memref<128x256xbf16, #tpu.memory_space<vmem>>, vector<128x256xbf16>
    %cst_74 = arith.constant dense<0.000000e+00> : vector<2x256xf32>
    %203 = tpu.matmul %201, %202, %cst_74 {dimension_numbers = #tpu.dot_dimension_numbers<[1], [0], [0], [1], [0, 0, 1, 1], [], []>} : vector<2x128xbf16>, vector<128x256xbf16>, vector<2x256xf32> -> vector<2x256xf32>
    %c14 = arith.constant 14 : index
    %c0_75 = arith.constant 0 : index
    %204 = vector.load %arg3[%c14, %c0_75] : memref<17x384xf32, #tpu.memory_space<vmem>>, vector<1x256xf32>
    %205 = vector.broadcast %204 : vector<1x256xf32> to vector<2x256xf32>
    %206 = arith.addf %203, %205 : vector<2x256xf32>
    %207 = arith.mulf %206, %206 : vector<2x256xf32>
    %208 = arith.mulf %206, %207 : vector<2x256xf32>
    %cst_76 = arith.constant 4.471500e-02 : f32
    %209 = vector.broadcast %cst_76 : f32 to vector<2x256xf32>
    %210 = arith.mulf %209, %208 : vector<2x256xf32>
    %211 = arith.addf %206, %210 : vector<2x256xf32>
    %cst_77 = arith.constant 0.797884583 : f32
    %212 = vector.broadcast %cst_77 : f32 to vector<2x256xf32>
    %213 = arith.mulf %212, %211 : vector<2x256xf32>
    %214 = math.tanh %213 : vector<2x256xf32>
    %cst_78 = arith.constant 1.000000e+00 : f32
    %215 = vector.broadcast %cst_78 : f32 to vector<2x256xf32>
    %216 = arith.addf %215, %214 : vector<2x256xf32>
    %cst_79 = arith.constant 5.000000e-01 : f32
    %217 = vector.broadcast %cst_79 : f32 to vector<2x256xf32>
    %218 = arith.mulf %217, %216 : vector<2x256xf32>
    %219 = arith.mulf %206, %218 : vector<2x256xf32>
    %220 = arith.truncf %219 : vector<2x256xf32> to vector<2x256xbf16>
    %c0_80 = arith.constant 0 : index
    %c0_81 = arith.constant 0 : index
    %221 = vector.load %arg11[%c0_80, %c0_81] : memref<256x128xbf16, #tpu.memory_space<vmem>>, vector<256x128xbf16>
    %cst_82 = arith.constant dense<0.000000e+00> : vector<2x128xf32>
    %222 = tpu.matmul %220, %221, %cst_82 {dimension_numbers = #tpu.dot_dimension_numbers<[1], [0], [0], [1], [0, 0, 1, 1], [], []>} : vector<2x256xbf16>, vector<256x128xbf16>, vector<2x128xf32> -> vector<2x128xf32>
    %223 = arith.addf %178, %222 : vector<2x128xf32>
    %c15 = arith.constant 15 : index
    %c0_83 = arith.constant 0 : index
    %224 = vector.load %arg3[%c15, %c0_83] : memref<17x384xf32, #tpu.memory_space<vmem>>, vector<1x128xf32>
    %225 = vector.broadcast %224 : vector<1x128xf32> to vector<2x128xf32>
    %226 = arith.addf %223, %225 : vector<2x128xf32>
    %227 = arith.truncf %226 : vector<2x128xf32> to vector<2x128xbf16>
    %c0_84 = arith.constant 0 : index
    %c0_85 = arith.constant 0 : index
    %228 = vector.load %arg12[%c0_84, %c0_85] : memref<128x128xbf16, #tpu.memory_space<vmem>>, vector<128x128xbf16>
    %cst_86 = arith.constant dense<0.000000e+00> : vector<2x128xf32>
    %229 = tpu.matmul %227, %228, %cst_86 {dimension_numbers = #tpu.dot_dimension_numbers<[1], [0], [0], [1], [0, 0, 1, 1], [], []>} : vector<2x128xbf16>, vector<128x128xbf16>, vector<2x128xf32> -> vector<2x128xf32>
    %c16 = arith.constant 16 : index
    %c0_87 = arith.constant 0 : index
    %230 = vector.load %arg3[%c16, %c0_87] : memref<17x384xf32, #tpu.memory_space<vmem>>, vector<1x128xf32>
    %231 = vector.broadcast %230 : vector<1x128xf32> to vector<2x128xf32>
    %232 = arith.addf %229, %231 : vector<2x128xf32>
    %c0_88 = arith.constant 0 : index
    %c0_89 = arith.constant 0 : index
    %233 = vector.load %arg13[%c0_88, %c0_89] : memref<2x128xf32, #tpu.memory_space<vmem>>, vector<2x128xf32>
    tpu.vector_store %arg13[%c0_88, %c0_89], %232 {strides = array<i32>} : memref<2x128xf32, #tpu.memory_space<vmem>>, vector<2x128xf32>,
    return
  }
  func.func @transform_0(%arg0: i32) -> (i32, i32) {
    %c0_i32 = arith.constant 0 : i32
    %c0_i32_0 = arith.constant 0 : i32
    %c0_i32_1 = arith.constant 0 : i32
    return %c0_i32, %c0_i32_0 : i32, i32
  }
  func.func @transform_1(%arg0: i32) -> (i32, i32, i32) {
    %c0_i32 = arith.constant 0 : i32
    %c0_i32_0 = arith.constant 0 : i32
    %c0_i32_1 = arith.constant 0 : i32
    %c0_i32_2 = arith.constant 0 : i32
    return %c0_i32, %c0_i32_0, %c0_i32_1 : i32, i32, i32
  }
  func.func @transform_2(%arg0: i32) -> (i32, i32) {
    %c0_i32 = arith.constant 0 : i32
    %c0_i32_0 = arith.constant 0 : i32
    %c0_i32_1 = arith.constant 0 : i32
    return %c0_i32, %c0_i32_0 : i32, i32
  }
  func.func @transform_3(%arg0: i32) -> (i32, i32) {
    %c0_i32 = arith.constant 0 : i32
    %c0_i32_0 = arith.constant 0 : i32
    %c0_i32_1 = arith.constant 0 : i32
    return %c0_i32, %c0_i32_0 : i32, i32
  }
  func.func @transform_4(%arg0: i32) -> (i32, i32) {
    %c0_i32 = arith.constant 0 : i32
    %c0_i32_0 = arith.constant 0 : i32
    %c0_i32_1 = arith.constant 0 : i32
    return %c0_i32, %c0_i32_0 : i32, i32
  }
  func.func @transform_5(%arg0: i32) -> (i32, i32) {
    %c0_i32 = arith.constant 0 : i32
    %c0_i32_0 = arith.constant 0 : i32
    %c0_i32_1 = arith.constant 0 : i32
    return %c0_i32, %c0_i32_0 : i32, i32
  }
  func.func @transform_6(%arg0: i32) -> (i32, i32) {
    %c0_i32 = arith.constant 0 : i32
    %c0_i32_0 = arith.constant 0 : i32
    %c0_i32_1 = arith.constant 0 : i32
    return %c0_i32, %c0_i32_0 : i32, i32
  }
  func.func @transform_7(%arg0: i32) -> (i32, i32) {
    %c0_i32 = arith.constant 0 : i32
    %c0_i32_0 = arith.constant 0 : i32
    %c0_i32_1 = arith.constant 0 : i32
    return %c0_i32, %c0_i32_0 : i32, i32
  }
  func.func @transform_8(%arg0: i32) -> (i32, i32) {
    %c0_i32 = arith.constant 0 : i32
    %c0_i32_0 = arith.constant 0 : i32
    %c0_i32_1 = arith.constant 0 : i32
    return %c0_i32, %c0_i32_0 : i32, i32
  }
  func.func @transform_9(%arg0: i32) -> (i32, i32) {
    %c0_i32 = arith.constant 0 : i32
    %c0_i32_0 = arith.constant 0 : i32
    %c0_i32_1 = arith.constant 0 : i32
    return %c0_i32, %c0_i32_0 : i32, i32
  }
  func.func @transform_10(%arg0: i32) -> (i32, i32) {
    %c0_i32 = arith.constant 0 : i32
    %c0_i32_0 = arith.constant 0 : i32
    %c0_i32_1 = arith.constant 0 : i32
    return %c0_i32, %c0_i32_0 : i32, i32
  }
  func.func @transform_11(%arg0: i32) -> (i32, i32) {
    %c0_i32 = arith.constant 0 : i32
    %c0_i32_0 = arith.constant 0 : i32
    %c0_i32_1 = arith.constant 0 : i32
    return %c0_i32, %c0_i32_0 : i32, i32
  }
  func.func @transform_12(%arg0: i32) -> (i32, i32) {
    %c0_i32 = arith.constant 0 : i32
    %c0_i32_0 = arith.constant 0 : i32
    %c0_i32_1 = arith.constant 0 : i32
    return %c0_i32, %c0_i32_0 : i32, i32
  }
}

</mosaic_0001>

<bundles_post_ra>
// kernel: stacked_model_forward.1
= control target key start
LH: loop header
LB: loop body
LE: loop exit
PB: predicated region body
PF: predicated region fallthrough
CT: control target
= control target key end

     0   :  { %17 = vsyncpa [#allocation3], 0  ;;  %s3374_s0 = inlined_call_operand.vmem [shape: f32[16,128], index: 0, kind: input, shape index: {}]   ;;  %s3375_s1 = inlined_call_operand.vmem [shape: f32[2,1,8], index: 1, kind: input, shape index: {}]   ;;  %s3376_s2 = inlined_call_operand.hbm [shape: f32[17,384], index: 2, kind: input, shape index: {}]   ;;  %s3377_s3 = inlined_call_operand.vmem [shape: bf16[128,384], index: 3, kind: input, shape index: {}]   ;;  %s3378_s4 = inlined_call_operand.hbm [shape: bf16[128,128], index: 4, kind: input, shape index: {}]   ;;  %s3379_s5 = inlined_call_operand.hbm [shape: bf16[128,256], index: 5, kind: input, shape index: {}]   ;;  %s3380_s6 = inlined_call_operand.hbm [shape: bf16[256,128], index: 6, kind: input, shape index: {}]   ;;  %s3381_s7 = inlined_call_operand.hbm [shape: bf16[128,384], index: 7, kind: input, shape index: {}]   ;;  %s3382_s8 = inlined_call_operand.hbm [shape: bf16[128,128], index: 8, kind: input, shape index: {}]   ;;  %s3383_s9 = inlined_call_operand.hbm [shape: bf16[128,256], index: 9, kind: input, shape index: {}]   ;;  %s3384_s10 = inlined_call_operand.hbm [shape: bf16[256,128], index: 10, kind: input, shape index: {}]   ;;  %s3385_s11 = inlined_call_operand.hbm [shape: bf16[128,128], index: 11, kind: input, shape index: {}]   ;;  %s3386_s12 = inlined_call_operand.hbm [shape: f32[2,128], index: 12, kind: output, shape index: {}]  }
   0x1   :  { %18 = vsyncpa [#allocation6], 0 }
   0x2   :  { %19 = vsyncpa [#allocation9], 0 }
   0x3   :  { %20 = vsyncpa [#allocation12], 0 }
   0x4   :  { %21 = vsyncpa [#allocation15], 0  ;;  %s46_s23 = sshll.u32 %s3378_s4, 4  ;;  %s47_s23 = int_to_ptr.hbm [resolvable:$true] %s46_s23 }
   0x5   :  { %22 = vsyncpa [#allocation4], 0  ;;  %s2971_s24 = smov [#allocation5]   ;;  %s72_s28 = sshll.u32 %s3380_s6, 4  ;;  %s73_s28 = int_to_ptr.hbm [resolvable:$true] %s72_s28 }
   0x6   :  { %s48_s25 = sshll.u32 %s2971_s24, 4  ;;  %s2972_s29 = smov 64   ;;  %s49_s25 = int_to_ptr.vmem [resolvable:$true] %s48_s25 }
   0x7   :  { %s2973_s30 = smov 4   ;;  %s2974_s13 = smov [#allocation8]  }
   0x8   :  { %54 = dma.hbm_to_vmem [thread:$0]  %s47_s23, 1024, %s49_s25, [#allocation6], %s2972_s29, %s2972_s29, %s2973_s30  }
   0x9   :  { %s74_s14 = sshll.u32 %s2974_s13, 4  ;;  %s98_s16 = sshll.u32 %s3382_s8, 4  ;;  %s75_s14 = int_to_ptr.vmem [resolvable:$true] %s74_s14  ;;  %s99_s16 = int_to_ptr.hbm [resolvable:$true] %s98_s16 }
   0xa   :  { %80 = dma.hbm_to_vmem [thread:$0]  %s73_s28, 2048, %s75_s14, [#allocation9], %s2972_s29, %s2972_s29, %s2973_s30  }
   0xb   :  { %s124_s18 = sshll.u32 %s3384_s10, 4  ;;  %s2975_s19 = smov [#allocation11]   ;;  %s125_s18 = int_to_ptr.hbm [resolvable:$true] %s124_s18 }
   0xc   :  { %s100_s20 = sshll.u32 %s2975_s19, 4  ;;  %s2976_s21 = smov [#allocation14]   ;;  %s101_s20 = int_to_ptr.vmem [resolvable:$true] %s100_s20 }
   0xd   :  { %106 = dma.hbm_to_vmem [thread:$0]  %s99_s16, 1024, %s101_s20, [#allocation12], %s2972_s29, %s2972_s29, %s2973_s30  }
   0xe   :  { %s126_s8 = sshll.u32 %s2976_s21, 4  ;;  %s31_s24 = sshll.u32 %s3376_s2, 4  ;;  %s127_s8 = int_to_ptr.vmem [resolvable:$true] %s126_s8  ;;  %s32_s24 = int_to_ptr.hbm [resolvable:$true] %s31_s24 }
   0xf   :  { %132 = dma.hbm_to_vmem [thread:$0]  %s125_s18, 2048, %s127_s8, [#allocation15], %s2972_s29, %s2972_s29, %s2973_s30  }
  0x10   :  { %s2977_s10 = smov [#allocation2]   ;;  %s59_s28 = sshll.u32 %s3379_s5, 4  ;;  %s60_s28 = int_to_ptr.hbm [resolvable:$true] %s59_s28 }
  0x11   :  { %s33_s25 = sshll.u32 %s2977_s10, 4  ;;  %s2978_s13 = smov 384   ;;  %s34_s25 = int_to_ptr.vmem [resolvable:$true] %s33_s25 }
  0x12   :  { %s2979_s14 = smov 24   ;;  %s2980_s15 = smov [#allocation7]  }
  0x13   :  { %39 = dma.hbm_to_vmem [thread:$0]  %s32_s24, 1152, %s34_s25, [#allocation3], %s2978_s13, %s2978_s13, %s2979_s14  }
  0x14   :  { %s61_s4 = sshll.u32 %s2980_s15, 4  ;;  %s2981_s2 = smov 128   ;;  %s62_s4 = int_to_ptr.vmem [resolvable:$true] %s61_s4 }
  0x15   :  { %s2982_s16 = smov 8   ;;  %s85_s18 = sshll.u32 %s3381_s7, 4  ;;  %s86_s18 = int_to_ptr.hbm [resolvable:$true] %s85_s18 }
  0x16   :  { %67 = dma.hbm_to_vmem [thread:$0]  %s60_s28, 2048, %s62_s4, [#allocation6], %s2981_s2, %s2981_s2, %s2982_s16  }
  0x17   :  { %s2983_s19 = smov [#allocation10]   ;;  %s111_s8 = sshll.u32 %s3383_s9, 4  ;;  %s112_s8 = int_to_ptr.hbm [resolvable:$true] %s111_s8 }
  0x18   :  { %s87_s20 = sshll.u32 %s2983_s19, 4  ;;  %s2984_s22 = smov 192   ;;  %s88_s20 = int_to_ptr.vmem [resolvable:$true] %s87_s20 }
  0x19   :  { %s2985_s23 = smov 12   ;;  %s2986_s24 = smov [#allocation13]  }
  0x1a   :  { %93 = dma.hbm_to_vmem [thread:$0]  %s86_s18, 3072, %s88_s20, [#allocation9], %s2984_s22, %s2984_s22, %s2985_s23  }
  0x1b   :  { %s113_s10 = sshll.u32 %s2986_s24, 4  ;;  %s137_s27 = sshll.u32 %s3385_s11, 4  ;;  %s114_s10 = int_to_ptr.vmem [resolvable:$true] %s113_s10  ;;  %s138_s27 = int_to_ptr.hbm [resolvable:$true] %s137_s27 }
  0x1c   :  { %119 = dma.hbm_to_vmem [thread:$0]  %s112_s8, 2048, %s114_s10, [#allocation12], %s2981_s2, %s2981_s2, %s2982_s16  }
  0x1d   :  { %s2987_s7 = smov [#allocation16]  }
  0x1e   :  { %s139_s28 = sshll.u32 %s2987_s7, 4  ;;  %s140_s28 = int_to_ptr.vmem [resolvable:$true] %s139_s28 }
  0x1f   :  { %145 = dma.hbm_to_vmem [thread:$0]  %s138_s27, 1024, %s140_s28, [#allocation15], %s2972_s29, %s2972_s29, %s2973_s30  }
  0x20   :  { %2959 = dma.done.wait [#allocation3], 1152  }
  0x21   :  { %2960 = vsyncadd [#allocation3], 4294966144 }
  0x22   :  { %2961 = dma.done.wait [#allocation6], 3072  }
  0x23   :  { %2962 = vsyncadd [#allocation6], 4294964224 }
  0x24   :  { %2963 = dma.done.wait [#allocation9], 5120  }
  0x25   :  { %2964 = vsyncadd [#allocation9], 4294962176 }
  0x26   :  { %2965 = dma.done.wait [#allocation12], 3072  }
  0x27   :  { %2966 = vsyncadd [#allocation12], 4294964224 }
  0x28   :  { %2967 = dma.done.wait [#allocation15], 3072  }
  0x29   :  { %2968 = vsyncadd [#allocation15], 4294964224  ;;  %v3100_v0 = vld [vmem:[%s3374_s0] sm:$0xff]  ;;  %v3106_v1 = vld [vmem:[%s3374_s0 + $0x8] sm:$0xff]  ;;  %v2988_v2 = vmov 128.0   ;;  %vm518_vm7 = vcmask 1043456  }
  0x2a   :  { %189 = vadd.xlane.f32.xlu0 %v3100_v0  ;;  %2675 = vrcp.f32 %v2988_v2  ;;  %v2055_v17 = vld [vmem:[%s3377_s3 + $0xa8] sm:$0xf]  ;;  %v2540_v18 = vld [vmem:[%s3377_s3 + $0xb0] sm:$0xf0]  ;;  %v2539_v19 = vld [vmem:[%s3377_s3 + $0xac] sm:$0xf] }
  0x2b   :  { %v2056_v20 = vor.u32 %v2540_v18, %v2055_v17  ;;  %v2057_v21 = vld [vmem:[%s3377_s3 + $0xb4] sm:$0xf0]  ;;  %v2063_v22 = vld [vmem:[%s3377_s3 + $0xb0] sm:$0xf]  ;;  %v2541_v23 = vld [vmem:[%s3377_s3 + $0xb8] sm:$0xf0] }
  0x2c   :  { %v2060_v24 = vor.u32 %v2539_v19, %v2057_v21  ;;  %v2064_v25 = vor.u32 %v2541_v23, %v2063_v22  ;;  %v2043_v26 = vld [vmem:[%s3377_s3 + $0x90] sm:$0xf]  ;;  %v2537_v27 = vld [vmem:[%s3377_s3 + $0x98] sm:$0xf0]  ;;  %v2536_v28 = vld [vmem:[%s3377_s3 + $0x94] sm:$0xf] }
  0x2d   :  { %410 = vmatpush.bf16.msra.mxu0 %v2056_v20  ;;  %v2044_v29 = vor.u32 %v2537_v27, %v2043_v26  ;;  %v2045_v30 = vld [vmem:[%s3377_s3 + $0x9c] sm:$0xf0]  ;;  %v2051_v31 = vld [vmem:[%s3377_s3 + $0x98] sm:$0xf]  ;;  %v2538_v32 = vld [vmem:[%s3377_s3 + $0xa0] sm:$0xf0] }
  0x2e   :  { %424 = vmatpush.bf16.msra.mxu1 %v2060_v24  ;;  %438 = vmatpush.bf16.msra.mxu2 %v2064_v25  ;;  %v2048_v33 = vor.u32 %v2536_v28, %v2045_v30  ;;  %v2052_v34 = vor.u32 %v2538_v32, %v2051_v31  ;;  %v2031_v35 = vld [vmem:[%s3377_s3 + $0x78] sm:$0xf]  ;;  %v2534_v36 = vld [vmem:[%s3377_s3 + $0x80] sm:$0xf0]  ;;  %v2533_v37 = vld [vmem:[%s3377_s3 + $0x7c] sm:$0xf] }
  0x2f   :  { %v2032_v38 = vor.u32 %v2534_v36, %v2031_v35  ;;  %v2033_v39 = vld [vmem:[%s3377_s3 + $0x84] sm:$0xf0]  ;;  %v2039_v40 = vld [vmem:[%s3377_s3 + $0x80] sm:$0xf]  ;;  %v2535_v41 = vld [vmem:[%s3377_s3 + $0x88] sm:$0xf0] }
  0x30   :  { %v2676_v3 = vpop.eup %2675  ;;  %v2036_v42 = vor.u32 %v2533_v37, %v2033_v39  ;;  %v2040_v43 = vor.u32 %v2535_v41, %v2039_v40  ;;  %v2019_v44 = vld [vmem:[%s3377_s3 + $0x60] sm:$0xf]  ;;  %v2531_v45 = vld [vmem:[%s3377_s3 + $0x68] sm:$0xf0]  ;;  %v2530_v46 = vld [vmem:[%s3377_s3 + $0x64] sm:$0xf] }
  0x31   :  { %v194_v4 = vmul.f32 128.0, %v2676_v3  ;;  %vm198_vm0 = vweird.f32 %v2676_v3  ;;  %411 = vmatpush.bf16.msra.mxu0 %v2044_v29  ;;  %v2020_v47 = vor.u32 %v2531_v45, %v2019_v44  ;;  %v2021_v48 = vld [vmem:[%s3377_s3 + $0x6c] sm:$0xf0]  ;;  %v2027_v49 = vld [vmem:[%s3377_s3 + $0x68] sm:$0xf]  ;;  %vm490_vm8 = vcmask 64512  }
  0x32   :  { %191 = vadd.xlane.f32.xlu0 %v3106_v1  ;;  %425 = vmatpush.bf16.msra.mxu1 %v2048_v33  ;;  %v2532_v50 = vld [vmem:[%s3377_s3 + $0x70] sm:$0xf0]  ;;  %v2024_v51 = vor.u32 %v2530_v46, %v2021_v48  ;;  %v2007_v53 = vld [vmem:[%s3377_s3 + $0x48] sm:$0xf]  ;;  %v2527_v55 = vld [vmem:[%s3377_s3 + $0x4c] sm:$0xf] }
  0x33   :  { %v195_v5 = vsub.f32 1.0, %v194_v4  ;;  %439 = vmatpush.bf16.msra.mxu2 %v2052_v34  ;;  %v2028_v52 = vor.u32 %v2532_v50, %v2027_v49  ;;  %v2528_v54 = vld [vmem:[%s3377_s3 + $0x50] sm:$0xf0]  ;;  %v2009_v57 = vld [vmem:[%s3377_s3 + $0x54] sm:$0xf0]  ;;  %s1955_s10 = sshll.u32 %s3386_s12, 4  ;;  %s1956_s10 = int_to_ptr.hbm [resolvable:$true] %s1955_s10 }
  0x34   :  { %v2008_v56 = vor.u32 %v2528_v54, %v2007_v53  ;;  %v2015_v58 = vld [vmem:[%s3377_s3 + $0x50] sm:$0xf]  ;;  %v2529_v59 = vld [vmem:[%s3377_s3 + $0x58] sm:$0xf0]  ;;  %v2012_v60 = vor.u32 %v2527_v55, %v2009_v57  ;;  %v2524_v2 = vld [vmem:[%s3377_s3 + $0x34] sm:$0xf] }
  0x35   :  { %v196_v6 = vmul.f32 %v2676_v3, %v195_v5  ;;  %412 = vmatpush.bf16.msra.mxu0 %v2032_v38  ;;  %v2016_v61 = vor.u32 %v2529_v59, %v2015_v58  ;;  %v1995_v62 = vld [vmem:[%s3377_s3 + $0x30] sm:$0xf]  ;;  %v2525_v63 = vld [vmem:[%s3377_s3 + $0x38] sm:$0xf0]  ;;  %v1997_v4 = vld [vmem:[%s3377_s3 + $0x3c] sm:$0xf0] }
  0x36   :  { %426 = vmatpush.bf16.msra.mxu1 %v2036_v42  ;;  %v2003_v5 = vld [vmem:[%s3377_s3 + $0x38] sm:$0xf]  ;;  %v1991_v17 = vld [vmem:[%s3377_s3 + $0x20] sm:$0xf]  ;;  %v2523_v18 = vld [vmem:[%s3377_s3 + $0x28] sm:$0xf0] }
  0x37   :  { %v197_v7 = vadd.f32 %v2676_v3, %v196_v6  ;;  %440 = vmatpush.bf16.msra.mxu2 %v2040_v43  ;;  %v2526_v6 = vld [vmem:[%s3377_s3 + $0x40] sm:$0xf0]  ;;  %v1992_v20 = vor.u32 %v2523_v18, %v1991_v17  ;;  %v1971_v21 = vld [vmem:[%s3377_s3] sm:$0xf]  ;;  %v2519_v22 = vld [vmem:[%s3377_s3 + $0x8] sm:$0xf0] }
  0x38   :  { %v2518_v23 = vld [vmem:[%s3377_s3 + $0x4] sm:$0xf]  ;;  %v1972_v25 = vor.u32 %v2519_v22, %v1971_v21  ;;  %v1973_v26 = vld [vmem:[%s3377_s3 + $0xc] sm:$0xf0]  ;;  %v1979_v27 = vld [vmem:[%s3377_s3 + $0x8] sm:$0xf] }
  0x39   :  { %v3109_v8 = vsel %vm198_vm0, %v2676_v3, %v197_v7  ;;  %413 = vmatpush.bf16.msra.mxu0 %v2020_v47  ;;  %v1996_v3 = vor.u32 %v2525_v63, %v1995_v62  ;;  %v2000_v7 = vor.u32 %v2524_v2, %v1997_v4  ;;  %v2520_v28 = vld [vmem:[%s3377_s3 + $0x10] sm:$0xf0]  ;;  %v1976_v30 = vor.u32 %v2518_v23, %v1973_v26  ;;  %v187_v50 = vld [vmem:[#allocation2] ss:$0 sm:$0xff]  ;;  %v188_v54 = vld [vmem:[#allocation2 + $0x1] ss:$0 sm:$0xff] }
  0x3a   :  { %427 = vmatpush.bf16.msra.mxu1 %v2024_v51  ;;  %v1980_v31 = vor.u32 %v2520_v28, %v1979_v27  ;;  %v274_v59 = vld [vmem:[#allocation2 + $0x2] ss:$8 sm:$0x7]  ;;  %v2673_v22 = vld [vmem:[%s3375_s1] ss:$0 sm:$0xff] }
  0x3b   :  { %441 = vmatpush.bf16.msra.mxu2 %v2028_v52  ;;  %v276_v62 = vperm.slane %v274_v59, 0  ;;  %v2674_v27 = vld [vmem:[%s3375_s1 + $0x1] ss:$0 sm:$0xff]  ;;  %s2989_s1 = smov [#allocation17]  }
  0x3c   :  { %s1953_s22 = sshll.u32 %s2989_s1, 4  ;;  %s1954_s22 = int_to_ptr.vmem [resolvable:$true] %s1953_s22 }
  0x3d   :  { %414 = vmatpush.bf16.msra.mxu0 %v2008_v56 }
  0x3e   :  { %428 = vmatpush.bf16.msra.mxu1 %v2012_v60  ;;  %v277_v60 = vperm.slane %v274_v59, 1 }
  0x3f   :  { %442 = vmatpush.bf16.msra.mxu2 %v2016_v61 }
  0x41   :  { %415 = vmatpush.bf16.msra.mxu0 %v1996_v3  ;;  %v278_v3 = vperm.slane %v274_v59, 2 }
  0x42   :  { %429 = vmatpush.bf16.msra.mxu1 %v2000_v7 }
  0x9d   :  { %v190_v9 = vpop.xlane.xlu0 %189 }
  0x9e   :  { %v200_v10 = vmul.f32 %v3109_v8, %v190_v9  ;;  %v2004_v9 = vor.u32 %v2526_v6, %v2003_v5 }
  0xa0   :  { %v3113_v11 = vsub.f32 %v3100_v0, %v200_v10  ;;  %443 = vmatpush.bf16.msra.mxu2 %v2004_v9  ;;  %v1983_v10 = vld [vmem:[%s3377_s3 + $0x18] sm:$0xf] }
  0xa2   :  { %v204_v12 = vmul.f32 %v3113_v11, %v3113_v11 }
  0xa4   :  { %206 = vadd.xlane.f32.xlu1 %v204_v12  ;;  %v2522_v12 = vld [vmem:[%s3377_s3 + $0x20] sm:$0xf0]  ;;  %444 = vmatpush.bf16.msra.mxu2 %v1992_v20 }
  0xa5   :  { %v192_v13 = vpop.xlane.xlu0 %191 }
  0xa6   :  { %v201_v14 = vmul.f32 %v3109_v8, %v192_v13  ;;  %v2521_v13 = vld [vmem:[%s3377_s3 + $0x1c] sm:$0xf] }
  0xa8   :  { %v3119_v15 = vsub.f32 %v3106_v1, %v201_v14  ;;  %v1984_v14 = vor.u32 %v2522_v12, %v1983_v10  ;;  %445 = vmatpush.bf16.msra.mxu2 %v1980_v31 }
  0xaa   :  { %v205_v16 = vmul.f32 %v3119_v15, %v3119_v15  ;;  %416 = vmatpush.bf16.msra.mxu0 %v1984_v14 }
  0xac   :  { %208 = vadd.xlane.f32.xlu1 %v205_v16  ;;  %v1985_v16 = vld [vmem:[%s3377_s3 + $0x24] sm:$0xf0] }
  0xad   :  { %v1988_v19 = vor.u32 %v2521_v13, %v1985_v16 }
  0xae   :  { %417 = vmatpush.bf16.msra.mxu0 %v1972_v25 }
  0xaf   :  { %430 = vmatpush.bf16.msra.mxu1 %v1988_v19 }
  0xb3   :  { %431 = vmatpush.bf16.msra.mxu1 %v1976_v30 }
 0x117   :  { %v207_v24 = vpop.xlane.xlu1 %206 }
 0x118   :  { %v210_v29 = vmul.f32 %v207_v24, %v3109_v8 }
 0x11a   :  { %v212_v32 = vadd.f32 1e-05, %v210_v29 }
 0x11c   :  { %2677 = vrsqrt.f32 %v212_v32  ;;  %vm220_vm2 = vweird.f32 %v212_v32 }
 0x11f   :  { %v209_v33 = vpop.xlane.xlu1 %208 }
 0x120   :  { %v211_v34 = vmul.f32 %v209_v33, %v3109_v8 }
 0x122   :  { %v2678_v35 = vpop.eup %2677  ;;  %v213_v36 = vadd.f32 1e-05, %v211_v34 }
 0x123   :  { %v215_v37 = vmul.f32 %v2678_v35, %v212_v32  ;;  %vm221_vm1 = vweird.f32 %v2678_v35 }
 0x124   :  { %2679 = vrsqrt.f32 %v213_v36  ;;  %vm222_vm3 = vmor %vm220_vm2, %vm221_vm1  ;;  %vm230_vm5 = vweird.f32 %v213_v36 }
 0x125   :  { %v216_v38 = vmul.f32 %v2678_v35, %v215_v37 }
 0x127   :  { %v217_v39 = vmul.f32 0.5, %v216_v38 }
 0x129   :  { %v218_v40 = vsub.f32 1.5, %v217_v39 }
 0x12a   :  { %v2680_v41 = vpop.eup %2679 }
 0x12b   :  { %v219_v42 = vmul.f32 %v2678_v35, %v218_v40  ;;  %v225_v43 = vmul.f32 %v2680_v41, %v213_v36  ;;  %vm231_vm4 = vweird.f32 %v2680_v41 }
 0x12c   :  { %vm232_vm6 = vmor %vm230_vm5, %vm231_vm4  ;;  %vm1221_vm5 = vcmask 1041409  }
 0x12d   :  { %v226_v44 = vmul.f32 %v2680_v41, %v225_v43  ;;  %v223_v45 = vsel %vm222_vm3, %v2678_v35, %v219_v42  ;;  %v2549_v42 = vld [vmem:[#allocation5 + $0x38] sm:$0xff]  ;;  %v2548_v43 = vld [vmem:[#allocation5 + $0x30] sm:$0xff] }
 0x12e   :  { %v234_v48 = vmul.f32 %v223_v45, %v3113_v11  ;;  %619 = vmatpush.bf16.msrb.mxu1 %v2549_v42  ;;  %v2547_v45 = vld [vmem:[#allocation5 + $0x28] sm:$0xff] }
 0x12f   :  { %v227_v46 = vmul.f32 0.5, %v226_v44 }
 0x130   :  { %v236_v53 = vmul.f32 %v234_v48, %v187_v50 }
 0x131   :  { %v228_v47 = vsub.f32 1.5, %v227_v46  ;;  %v2546_v46 = vld [vmem:[#allocation5 + $0x20] sm:$0xff] }
 0x132   :  { %v238_v56 = vadd.f32 %v236_v53, %v188_v54  ;;  %620 = vmatpush.bf16.msrb.mxu1 %v2548_v43  ;;  %v2127_v43 = vld [vmem:[#allocation7 + $0x38] sm:$0xf0] }
 0x133   :  { %v229_v49 = vmul.f32 %v2680_v41, %v228_v47 }
 0x135   :  { %v233_v51 = vsel %vm232_vm6, %v2680_v41, %v229_v49  ;;  %vm1289_vm6 = vcmask 1040384  }
 0x136   :  { %v235_v52 = vmul.f32 %v233_v51, %v3119_v15  ;;  %621 = vmatpush.bf16.msrb.mxu1 %v2547_v45  ;;  %v2117_v45 = vld [vmem:[#allocation7 + $0x20] sm:$0xf] }
 0x138   :  { %v237_v55 = vmul.f32 %v235_v52, %v187_v50  ;;  %v2545_v50 = vld [vmem:[#allocation5 + $0x18] sm:$0xff] }
 0x13a   :  { %v239_v57 = vadd.f32 %v237_v55, %v188_v54  ;;  %622 = vmatpush.bf16.msrb.mxu1 %v2546_v46  ;;  %v2544_v55 = vld [vmem:[#allocation5 + $0x10] sm:$0xff]  ;;  %v2555_v46 = vld [vmem:[#allocation7 + $0x24] sm:$0xf0] }
 0x13c   :  { %v240_v58 = vpack.c.bf16 %v239_v57, %v238_v56  ;;  %v2543_v56 = vld [vmem:[#allocation5 + $0x8] sm:$0xff]  ;;  %v2542_v57 = vld [vmem:[#allocation5] sm:$0xff] }
 0x13e   :  { %418 = vmatmul.bf16.vlgmr.msra.gmra.mxu0 %v240_v58  ;;  %432 = vmatmul.bf16.vlgmr.msra.gmra.mxu1 %v240_v58 }
 0x13f   :  { %446 = vmatmul.bf16.vlgmr.msra.gmra.mxu2 %v240_v58  ;;  %623 = vmatpush.bf16.msrb.mxu1 %v2545_v50 }
 0x143   :  { %624 = vmatpush.bf16.msrb.mxu1 %v2544_v55  ;;  %v2111_v55 = vld [vmem:[#allocation7 + $0x18] sm:$0xf0] }
 0x147   :  { %625 = vmatpush.bf16.msrb.mxu1 %v2543_v56  ;;  %v2101_v56 = vld [vmem:[#allocation7] sm:$0xf] }
 0x14b   :  { %626 = vmatpush.bf16.msrb.mxu1 %v2542_v57  ;;  %v2551_v57 = vld [vmem:[#allocation7 + $0x4] sm:$0xf0] }
 0x1bb   :  { %v433_v61 = vpop.f32.mrf.mxu1  ;;  %v419_v63 = vpop.f32.mrf.mxu0 }
 0x1bc   :  { %v434_v11 = vadd.f32 %v433_v61, %v277_v60  ;;  %v420_v4 = vadd.f32 %v419_v63, %v276_v62  ;;  %v635_v63 = vld [vmem:[#allocation2 + $0x3] ss:$0 sm:$0xff] }
 0x1be   :  { %v454_v2 = vpack.c.bf16 %v434_v11, %v434_v11  ;;  %v452_v9 = vpack.c.bf16 %v420_v4, %v420_v4 }
 0x1c0   :  { %471 = vmatpush.bf16.xpose.msra.mxu3 %v454_v2 }
 0x1c2   :  { %v447_v15 = vpop.f32.mrf.mxu2 }
 0x1c3   :  { %v448_v5 = vadd.f32 %v447_v15, %v278_v3  ;;  %v435_v6 = vpop.f32.mrf.mxu1  ;;  %v421_v18 = vpop.f32.mrf.mxu0 }
 0x1c4   :  { %v436_v7 = vadd.f32 %v435_v6, %v277_v60  ;;  %v422_v20 = vadd.f32 %v421_v18, %v276_v62 }
 0x1c5   :  { %v456_v10 = vpack.c.bf16 %v448_v5, %v448_v5 }
 0x1c6   :  { %v455_v12 = vpack.c.bf16 %v436_v7, %v436_v7  ;;  %v453_v21 = vpack.c.bf16 %v422_v20, %v422_v20 }
 0x1c7   :  { %472 = vmatmul.bf16.vlgmr.msra.gmra.mxu3 %v452_v9  ;;  %v520_v13 = vsel %vm518_vm7, %v456_v10, 0 }
 0x1c8   :  { %484 = vmatpush.bf16.xpose.msrb.mxu3 %v455_v12 }
 0x1ca   :  { %v449_v14 = vpop.f32.mrf.mxu2 }
 0x1cb   :  { %v450_v16 = vadd.f32 %v449_v14, %v278_v3  ;;  %v2157_v14 = vld [vmem:[#allocation7 + $0x70] sm:$0xf] }
 0x1cd   :  { %v457_v17 = vpack.c.bf16 %v450_v16, %v450_v16  ;;  %v2565_v16 = vld [vmem:[#allocation7 + $0x74] sm:$0xf0] }
 0x1ce   :  { %v2158_v18 = vor.u32 %v2565_v16, %v2157_v14 }
 0x1cf   :  { %v539_v19 = vsel %vm518_vm7, %v457_v17, 0  ;;  %v2564_v17 = vld [vmem:[#allocation7 + $0x74] sm:$0xf] }
 0x1d0   :  { %529 = vmatpush.bf16.msra.mxu3 %v520_v13  ;;  %548 = vmatpush.bf16.msrb.mxu0 %v539_v19  ;;  %v2159_v19 = vld [vmem:[#allocation7 + $0x78] sm:$0xf0] }
 0x1d1   :  { %v2162_v20 = vor.u32 %v2564_v17, %v2159_v19  ;;  %788 = vmatpush.bf16.msrb.mxu2 %v2158_v18 }
 0x1d7   :  { %485 = vmatmul.bf16.vlgmr.msrb.gmra.mxu3 %v453_v21  ;;  %v2149_v21 = vld [vmem:[#allocation7 + $0x60] sm:$0xf] }
 0x1d8   :  { %802 = vmatpush.bf16.msrb.mxu3 %v2162_v20 }
 0x24a   :  { %v473_v23 = vpop.f32.mrf.mxu3 }
 0x24b   :  { %v474_v24 = vadd.f32 %v2673_v22, %v473_v23  ;;  %v2563_v22 = vld [vmem:[#allocation7 + $0x64] sm:$0xf0]  ;;  %v2562_v23 = vld [vmem:[#allocation7 + $0x64] sm:$0xf] }
 0x24d   :  { %v491_v25 = vsel %vm490_vm8, %v474_v24, -inf }
 0x24e   :  { %492 = vmax.xlane.f32.xlu2 %v491_v25  ;;  %v2151_v25 = vld [vmem:[#allocation7 + $0x68] sm:$0xf0] }
 0x252   :  { %v475_v26 = vpop.f32.mrf.mxu3 }
 0x253   :  { %v2154_v26 = vor.u32 %v2562_v23, %v2151_v25 }
 0x255   :  { %803 = vmatpush.bf16.msrb.mxu3 %v2154_v26 }
 0x25a   :  { %v486_v28 = vpop.f32.mrf.mxu3 }
 0x25b   :  { %v487_v29 = vadd.f32 %v2674_v27, %v486_v28  ;;  %v2141_v27 = vld [vmem:[#allocation7 + $0x50] sm:$0xf]  ;;  %v2561_v28 = vld [vmem:[#allocation7 + $0x54] sm:$0xf0] }
 0x25d   :  { %v494_v30 = vsel %vm490_vm8, %v487_v29, -inf }
 0x25e   :  { %495 = vmax.xlane.f32.xlu2 %v494_v30  ;;  %v2142_v30 = vor.u32 %v2561_v28, %v2141_v27  ;;  %v639_v28 = vld [vmem:[#allocation2 + $0x5] ss:$0 sm:$0xff] }
 0x262   :  { %v488_v31 = vpop.f32.mrf.mxu3 }
 0x263   :  { %v2143_v31 = vld [vmem:[#allocation7 + $0x58] sm:$0xf0] }
 0x2c1   :  { %v493_v32 = vpop.xlane.xlu2 %492 }
 0x2c2   :  { %v497_v33 = vsub.f32 %v474_v24, %v493_v32  ;;  %v2150_v24 = vor.u32 %v2563_v22, %v2149_v21 }
 0x2c4   :  { %v499_v34 = vmul.f32 1.442695, %v497_v33  ;;  %789 = vmatpush.bf16.msrb.mxu2 %v2150_v24  ;;  %v2133_v33 = vld [vmem:[#allocation7 + $0x40] sm:$0xf]  ;;  %v638_v24 = vld [vmem:[#allocation2 + $0x4] ss:$0 sm:$0xff] }
 0x2c6   :  { %2681 = vpow2.f32 %v499_v34  ;;  %v2559_v34 = vld [vmem:[#allocation7 + $0x44] sm:$0xf0] }
 0x2c8   :  { %790 = vmatpush.bf16.msrb.mxu2 %v2142_v30 }
 0x2cc   :  { %v2682_v35 = vpop.eup %2681 }
 0x2cd   :  { %v503_v36 = vsel %vm490_vm8, %v2682_v35, 0.0 }
 0x2ce   :  { %504 = vadd.xlane.f32.xlu0 %v503_v36  ;;  %v2134_v36 = vor.u32 %v2559_v34, %v2133_v33  ;;  %v2573_v33 = vld [vmem:[#allocation8 + $0x38] sm:$0xff] }
 0x2cf   :  { %v2581_v34 = vld [vmem:[#allocation8 + $0x78] sm:$0xff]  ;;  %982 = vmatpush.bf16.msra.mxu0 %v2573_v33 }
 0x2d0   :  { %791 = vmatpush.bf16.msrb.mxu2 %v2134_v36  ;;  %996 = vmatpush.bf16.msra.mxu1 %v2581_v34  ;;  %v2571_v36 = vld [vmem:[#allocation8 + $0x28] sm:$0xff] }
 0x2d1   :  { %v496_v37 = vpop.xlane.xlu2 %495 }
 0x2d2   :  { %v498_v38 = vsub.f32 %v487_v29, %v496_v37  ;;  %v2560_v29 = vld [vmem:[#allocation7 + $0x54] sm:$0xf]  ;;  %v2135_v37 = vld [vmem:[#allocation7 + $0x48] sm:$0xf0] }
 0x2d3   :  { %v2146_v32 = vor.u32 %v2560_v29, %v2143_v31 }
 0x2d4   :  { %v501_v39 = vmul.f32 1.442695, %v498_v38 }
 0x2d5   :  { %804 = vmatpush.bf16.msrb.mxu3 %v2146_v32 }
 0x2d6   :  { %2683 = vpow2.f32 %v501_v39  ;;  %v2125_v39 = vld [vmem:[#allocation7 + $0x30] sm:$0xf] }
 0x2dc   :  { %v2684_v40 = vpop.eup %2683 }
 0x2dd   :  { %v506_v41 = vsel %vm490_vm8, %v2684_v40, 0.0 }
 0x2de   :  { %507 = vadd.xlane.f32.xlu1 %v506_v41  ;;  %v2556_v41 = vld [vmem:[#allocation7 + $0x34] sm:$0xf] }
 0x341   :  { %v505_v44 = vpop.xlane.xlu0 %504 }
 0x342   :  { %2685 = vrcp.f32 %v505_v44  ;;  %v2130_v44 = vor.u32 %v2556_v41, %v2127_v43  ;;  %v2568_v41 = vld [vmem:[#allocation8 + $0x10] sm:$0xff]  ;;  %v702_v43 = vld [vmem:[#allocation2 + $0x6] ss:$8 sm:$0x3] }
 0x348   :  { %v2686_v47 = vpop.eup %2685 }
 0x349   :  { %v511_v48 = vmul.f32 %v2686_v47, %v2682_v35  ;;  %v2558_v35 = vld [vmem:[#allocation7 + $0x44] sm:$0xf] }
 0x34a   :  { %v2138_v38 = vor.u32 %v2558_v35, %v2135_v37  ;;  %v2554_v47 = vld [vmem:[#allocation7 + $0x24] sm:$0xf]  ;;  %v2580_v35 = vld [vmem:[#allocation8 + $0x70] sm:$0xff]  ;;  %v2579_v37 = vld [vmem:[#allocation8 + $0x68] sm:$0xff] }
 0x34b   :  { %v513_v49 = vpack.c.bf16 %v511_v48, %v511_v48  ;;  %v2118_v48 = vor.u32 %v2555_v46, %v2117_v45  ;;  %997 = vmatpush.bf16.msra.mxu1 %v2580_v35  ;;  %v2575_v45 = vld [vmem:[#allocation8 + $0x48] sm:$0xff]  ;;  %v704_v46 = vperm.slane %v702_v43, 0 }
 0x34c   :  { %805 = vmatpush.bf16.msrb.mxu3 %v2138_v38  ;;  %v2578_v38 = vld [vmem:[#allocation8 + $0x60] sm:$0xff] }
 0x34d   :  { %2065 = vmatmul.msk.bf16.vlgmr.msra.gmra.mxu3 %vm490_vm8, %v513_v49  ;;  %v2119_v49 = vld [vmem:[#allocation7 + $0x28] sm:$0xf0] }
 0x34e   :  { %v2122_v50 = vor.u32 %v2554_v47, %v2119_v49  ;;  %v705_v47 = vperm.slane %v702_v43, 1 }
 0x34f   :  { %998 = vmatpush.bf16.msra.mxu1 %v2579_v37 }
 0x350   :  { %806 = vmatpush.bf16.msrb.mxu3 %v2130_v44  ;;  %v2567_v44 = vld [vmem:[#allocation8 + $0x8] sm:$0xff] }
 0x351   :  { %v508_v51 = vpop.xlane.xlu1 %507 }
 0x352   :  { %2687 = vrcp.f32 %v508_v51  ;;  %v2109_v51 = vld [vmem:[#allocation7 + $0x10] sm:$0xf] }
 0x353   :  { %999 = vmatpush.bf16.msra.mxu1 %v2578_v38  ;;  %v1012_v38 = vld [vmem:[#allocation2 + $0x7] ss:$0 sm:$0xff] }
 0x354   :  { %807 = vmatpush.bf16.msrb.mxu3 %v2122_v50  ;;  %v2566_v50 = vld [vmem:[#allocation8] sm:$0xff] }
 0x358   :  { %v2688_v52 = vpop.eup %2687 }
 0x359   :  { %v512_v53 = vmul.f32 %v2688_v52, %v2684_v40  ;;  %v2557_v40 = vld [vmem:[#allocation7 + $0x34] sm:$0xf0] }
 0x35a   :  { %v2126_v42 = vor.u32 %v2557_v40, %v2125_v39  ;;  %v2553_v52 = vld [vmem:[#allocation7 + $0x14] sm:$0xf0] }
 0x35b   :  { %v514_v54 = vpack.c.bf16 %v512_v53, %v512_v53  ;;  %v2552_v53 = vld [vmem:[#allocation7 + $0x14] sm:$0xf]  ;;  %v2569_v39 = vld [vmem:[#allocation8 + $0x18] sm:$0xff] }
 0x35c   :  { %792 = vmatpush.bf16.msrb.mxu2 %v2126_v42  ;;  %v2577_v40 = vld [vmem:[#allocation8 + $0x58] sm:$0xff]  ;;  %v2576_v42 = vld [vmem:[#allocation8 + $0x50] sm:$0xff] }
 0x35d   :  { %2066 = vmatmul.msk.bf16.vlgmr.msrb.gmra.mxu0 %vm490_vm8, %v514_v54  ;;  %v2110_v54 = vor.u32 %v2553_v52, %v2109_v51  ;;  %1000 = vmatpush.bf16.msra.mxu1 %v2577_v40  ;;  %v2574_v51 = vld [vmem:[#allocation8 + $0x40] sm:$0xff] }
 0x360   :  { %793 = vmatpush.bf16.msrb.mxu2 %v2118_v48 }
 0x361   :  { %1001 = vmatpush.bf16.msra.mxu1 %v2576_v42 }
 0x364   :  { %794 = vmatpush.bf16.msrb.mxu2 %v2110_v54 }
 0x365   :  { %1002 = vmatpush.bf16.msra.mxu1 %v2575_v45 }
 0x369   :  { %1003 = vmatpush.bf16.msra.mxu1 %v2574_v51 }
 0x3d0   :  { %v531_v58 = vpop.f32.mrf.mxu3 }
 0x3d8   :  { %v533_v59 = vpop.f32.mrf.mxu3 }
 0x3d9   :  { %v2114_v59 = vor.u32 %v2552_v53, %v2111_v55 }
 0x3da   :  { %v550_v60 = vpop.f32.mrf.mxu0 }
 0x3db   :  { %v554_v61 = vpack.c.bf16 %v550_v60, %v531_v58  ;;  %v2550_v60 = vld [vmem:[#allocation7 + $0x4] sm:$0xf]  ;;  %808 = vmatpush.bf16.msrb.mxu3 %v2114_v59 }
 0x3dd   :  { %627 = vmatmul.bf16.vlgmr.msrb.gmra.mxu1 %v554_v61  ;;  %v2103_v61 = vld [vmem:[#allocation7 + $0x8] sm:$0xf0] }
 0x3e2   :  { %v552_v11 = vpop.f32.mrf.mxu0 }
 0x45a   :  { %v628_v62 = vpop.f32.mrf.mxu1 }
 0x45b   :  { %v633_v2 = vadd.f32 %v628_v62, %v3100_v0  ;;  %v2102_v62 = vor.u32 %v2551_v57, %v2101_v56 }
 0x45d   :  { %v3286_v3 = vadd.f32 %v635_v63, %v633_v2  ;;  %795 = vmatpush.bf16.msrb.mxu2 %v2102_v62 }
 0x45f   :  { %640 = vadd.xlane.f32.xlu2 %v3286_v3 }
 0x462   :  { %v630_v4 = vpop.f32.mrf.mxu1 }
 0x463   :  { %v634_v15 = vadd.f32 %v630_v4, %v3106_v1 }
 0x465   :  { %v3290_v5 = vadd.f32 %v635_v63, %v634_v15  ;;  %v2106_v63 = vor.u32 %v2550_v60, %v2103_v61 }
 0x467   :  { %642 = vadd.xlane.f32.xlu0 %v3290_v5  ;;  %809 = vmatpush.bf16.msrb.mxu3 %v2106_v63 }
 0x4d2   :  { %v641_v6 = vpop.xlane.xlu2 %640 }
 0x4d3   :  { %v644_v7 = vmul.f32 %v641_v6, %v3109_v8 }
 0x4d5   :  { %v3295_v9 = vsub.f32 %v3286_v3, %v644_v7 }
 0x4d7   :  { %v648_v0 = vmul.f32 %v3295_v9, %v3295_v9 }
 0x4d9   :  { %650 = vadd.xlane.f32.xlu1 %v648_v0 }
 0x4da   :  { %v643_v10 = vpop.xlane.xlu0 %642 }
 0x4db   :  { %v645_v12 = vmul.f32 %v643_v10, %v3109_v8 }
 0x4dd   :  { %v3301_v13 = vsub.f32 %v3290_v5, %v645_v12 }
 0x4df   :  { %v649_v1 = vmul.f32 %v3301_v13, %v3301_v13 }
 0x4e1   :  { %652 = vadd.xlane.f32.xlu2 %v649_v1 }
 0x54c   :  { %v651_v58 = vpop.xlane.xlu1 %650 }
 0x54d   :  { %v654_v11 = vmul.f32 %v651_v58, %v3109_v8 }
 0x54f   :  { %v656_v2 = vadd.f32 1e-05, %v654_v11 }
 0x551   :  { %2689 = vrsqrt.f32 %v656_v2  ;;  %vm664_vm10 = vweird.f32 %v656_v2 }
 0x554   :  { %v653_v4 = vpop.xlane.xlu2 %652 }
 0x555   :  { %v655_v15 = vmul.f32 %v653_v4, %v3109_v8 }
 0x557   :  { %v2690_v6 = vpop.eup %2689  ;;  %v657_v7 = vadd.f32 1e-05, %v655_v15 }
 0x558   :  { %v659_v0 = vmul.f32 %v2690_v6, %v656_v2  ;;  %vm665_vm9 = vweird.f32 %v2690_v6 }
 0x559   :  { %2691 = vrsqrt.f32 %v657_v7  ;;  %vm666_vm11 = vmor %vm664_vm10, %vm665_vm9  ;;  %vm674_vm13 = vweird.f32 %v657_v7  ;;  %vm1328_vm9 = vcmask 57344  }
 0x55a   :  { %v660_v10 = vmul.f32 %v2690_v6, %v659_v0 }
 0x55c   :  { %v661_v12 = vmul.f32 0.5, %v660_v10 }
 0x55e   :  { %v662_v1 = vsub.f32 1.5, %v661_v12 }
 0x55f   :  { %v2692_v14 = vpop.eup %2691 }
 0x560   :  { %v663_v16 = vmul.f32 %v2690_v6, %v662_v1  ;;  %v669_v17 = vmul.f32 %v2692_v14, %v657_v7  ;;  %vm675_vm12 = vweird.f32 %v2692_v14 }
 0x561   :  { %vm676_vm14 = vmor %vm674_vm13, %vm675_vm12 }
 0x562   :  { %v670_v18 = vmul.f32 %v2692_v14, %v669_v17  ;;  %v667_v19 = vsel %vm666_vm11, %v2690_v6, %v663_v16 }
 0x563   :  { %v678_v22 = vmul.f32 %v667_v19, %v3295_v9  ;;  %v2572_v9 = vld [vmem:[#allocation8 + $0x30] sm:$0xff] }
 0x564   :  { %v671_v20 = vmul.f32 0.5, %v670_v18  ;;  %983 = vmatpush.bf16.msra.mxu0 %v2572_v9 }
 0x565   :  { %v680_v27 = vmul.f32 %v678_v22, %v638_v24 }
 0x566   :  { %v672_v21 = vsub.f32 1.5, %v671_v20 }
 0x567   :  { %v682_v30 = vadd.f32 %v680_v27, %v639_v28 }
 0x568   :  { %v673_v23 = vmul.f32 %v2692_v14, %v672_v21  ;;  %984 = vmatpush.bf16.msra.mxu0 %v2571_v36 }
 0x56a   :  { %v677_v25 = vsel %vm676_vm14, %v2692_v14, %v673_v23 }
 0x56b   :  { %v679_v26 = vmul.f32 %v677_v25, %v3301_v13  ;;  %v2570_v13 = vld [vmem:[#allocation8 + $0x20] sm:$0xff] }
 0x56c   :  { %985 = vmatpush.bf16.msra.mxu0 %v2570_v13 }
 0x56d   :  { %v681_v29 = vmul.f32 %v679_v26, %v638_v24 }
 0x56f   :  { %v683_v31 = vadd.f32 %v681_v29, %v639_v28 }
 0x570   :  { %986 = vmatpush.bf16.msra.mxu0 %v2569_v39 }
 0x571   :  { %v684_v32 = vpack.c.bf16 %v683_v31, %v682_v30 }
 0x573   :  { %796 = vmatmul.bf16.vlgmr.msrb.gmra.mxu2 %v684_v32  ;;  %810 = vmatmul.bf16.vlgmr.msrb.gmra.mxu3 %v684_v32 }
 0x574   :  { %987 = vmatpush.bf16.msra.mxu0 %v2568_v41 }
 0x578   :  { %988 = vmatpush.bf16.msra.mxu0 %v2567_v44 }
 0x57c   :  { %989 = vmatpush.bf16.msra.mxu0 %v2566_v50 }
 0x5f6   :  { %v797_v48 = vpop.f32.mrf.mxu2  ;;  %v811_v49 = vpop.f32.mrf.mxu3 }
 0x5f7   :  { %v798_v52 = vadd.f32 %v797_v48, %v704_v46  ;;  %v812_v53 = vadd.f32 %v811_v49, %v705_v47 }
 0x5f9   :  { %v816_v54 = vmul.f32 %v798_v52, %v798_v52  ;;  %v817_v55 = vmul.f32 %v812_v53, %v812_v53 }
 0x5fb   :  { %v820_v56 = vmul.f32 %v816_v54, %v798_v52  ;;  %v821_v57 = vmul.f32 %v817_v55, %v812_v53  ;;  %v2596_v54 = vld [vmem:[#allocation10 + $0xb0] sm:$0xf] }
 0x5fd   :  { %v824_v58 = vmul.f32 0.044715, %v820_v56  ;;  %v825_v59 = vmul.f32 0.044715, %v821_v57  ;;  %v2287_v56 = vld [vmem:[#allocation10 + $0xb8] sm:$0xf0] }
 0x5fe   :  { %v799_v60 = vpop.f32.mrf.mxu2  ;;  %v813_v61 = vpop.f32.mrf.mxu3  ;;  %v2290_v57 = vor.u32 %v2596_v54, %v2287_v56  ;;  %v2582_v56 = vld [vmem:[#allocation10 + $0x8] sm:$0xf] }
 0x5ff   :  { %v828_v11 = vadd.f32 %v824_v58, %v798_v52  ;;  %v829_v62 = vadd.f32 %v825_v59, %v812_v53  ;;  %v800_v63 = vadd.f32 %v799_v60, %v704_v46  ;;  %v814_v2 = vadd.f32 %v813_v61, %v705_v47  ;;  %v2277_v58 = vld [vmem:[#allocation10 + $0x94] sm:$0xf]  ;;  %v2595_v59 = vld [vmem:[#allocation10 + $0x9c] sm:$0xf0]  ;;  %v2594_v60 = vld [vmem:[#allocation10 + $0x98] sm:$0xf] }
 0x600   :  { %1179 = vmatpush.bf16.msra.mxu3 %v2290_v57  ;;  %v2278_v61 = vor.u32 %v2595_v59, %v2277_v58  ;;  %v2231_v57 = vld [vmem:[#allocation10 + $0x10] sm:$0xf0] }
 0x601   :  { %v832_v4 = vmul.f32 0.7978846, %v828_v11  ;;  %v818_v15 = vmul.f32 %v800_v63, %v800_v63  ;;  %v819_v6 = vmul.f32 %v814_v2, %v814_v2  ;;  %v833_v7 = vmul.f32 0.7978846, %v829_v62  ;;  %v2279_v11 = vld [vmem:[#allocation10 + $0xa0] sm:$0xf0] }
 0x602   :  { %v2282_v62 = vor.u32 %v2594_v60, %v2279_v11  ;;  %v2234_v60 = vor.u32 %v2582_v56, %v2231_v57  ;;  %v2297_v11 = vld [vmem:[#allocation10 + $0x18] sm:$0xf] }
 0x603   :  { %v822_v0 = vmul.f32 %v818_v15, %v800_v63  ;;  %v823_v10 = vmul.f32 %v819_v6, %v814_v2  ;;  %2693 = vtanh.f32 %v832_v4  ;;  %v2269_v15 = vld [vmem:[#allocation10 + $0x7c] sm:$0xf]  ;;  %v2593_v6 = vld [vmem:[#allocation10 + $0x84] sm:$0xf0] }
 0x604   :  { %2695 = vtanh.f32 %v833_v7  ;;  %1180 = vmatpush.bf16.msra.mxu3 %v2282_v62  ;;  %v2592_v7 = vld [vmem:[#allocation10 + $0x80] sm:$0xf]  ;;  %v2599_v62 = vld [vmem:[#allocation10 + $0x20] sm:$0xf0] }
 0x605   :  { %v826_v12 = vmul.f32 0.044715, %v822_v0  ;;  %v827_v1 = vmul.f32 0.044715, %v823_v10  ;;  %v2270_v0 = vor.u32 %v2593_v6, %v2269_v15  ;;  %v2271_v10 = vld [vmem:[#allocation10 + $0x88] sm:$0xf0] }
 0x607   :  { %v830_v14 = vadd.f32 %v826_v12, %v800_v63  ;;  %v831_v16 = vadd.f32 %v827_v1, %v814_v2  ;;  %v2274_v12 = vor.u32 %v2592_v7, %v2271_v10  ;;  %v2317_v1 = vld [vmem:[#allocation10 + $0x90] sm:$0xf] }
 0x609   :  { %v834_v17 = vmul.f32 0.7978846, %v830_v14  ;;  %v835_v18 = vmul.f32 0.7978846, %v831_v16  ;;  %v2694_v19 = vpop.eup %2693  ;;  %v2604_v14 = vld [vmem:[#allocation10 + $0x98] sm:$0xf0]  ;;  %1181 = vmatpush.bf16.msra.mxu3 %v2274_v12 }
 0x60a   :  { %v2696_v20 = vpop.eup %2695  ;;  %v840_v21 = vadd.f32 1.0, %v2694_v19  ;;  %v2318_v16 = vor.u32 %v2604_v14, %v2317_v1  ;;  %v2590_v19 = vld [vmem:[#allocation10 + $0x68] sm:$0xf] }
 0x60b   :  { %2697 = vtanh.f32 %v834_v17  ;;  %v841_v22 = vadd.f32 1.0, %v2696_v20  ;;  %v2261_v17 = vld [vmem:[#allocation10 + $0x64] sm:$0xf] }
 0x60c   :  { %2699 = vtanh.f32 %v835_v18  ;;  %v844_v25 = vmul.f32 0.5, %v840_v21  ;;  %v2591_v18 = vld [vmem:[#allocation10 + $0x6c] sm:$0xf0]  ;;  %v2263_v21 = vld [vmem:[#allocation10 + $0x70] sm:$0xf0] }
 0x60d   :  { %v845_v27 = vmul.f32 0.5, %v841_v22  ;;  %v2262_v20 = vor.u32 %v2591_v18, %v2261_v17  ;;  %v2266_v22 = vor.u32 %v2590_v19, %v2263_v21 }
 0x60e   :  { %v848_v31 = vmul.f32 %v844_v25, %v798_v52  ;;  %v2285_v52 = vld [vmem:[#allocation10 + $0xac] sm:$0xf] }
 0x60f   :  { %v849_v33 = vmul.f32 %v845_v27, %v812_v53  ;;  %v2597_v53 = vld [vmem:[#allocation10 + $0xb4] sm:$0xf0]  ;;  %1182 = vmatpush.bf16.msra.mxu3 %v2266_v22 }
 0x610   :  { %v2286_v55 = vor.u32 %v2597_v53, %v2285_v52  ;;  %v2589_v27 = vld [vmem:[#allocation10 + $0x54] sm:$0xf0]  ;;  %v2229_v52 = vld [vmem:[#allocation10 + $0x4] sm:$0xf] }
 0x611   :  { %v2698_v23 = vpop.eup %2697 }
 0x612   :  { %v2700_v24 = vpop.eup %2699  ;;  %v842_v26 = vadd.f32 1.0, %v2698_v23  ;;  %1165 = vmatpush.bf16.msra.mxu2 %v2286_v55  ;;  %v2313_v23 = vld [vmem:[#allocation10 + $0x78] sm:$0xf]  ;;  %v2583_v55 = vld [vmem:[#allocation10 + $0xc] sm:$0xf0] }
 0x613   :  { %v843_v28 = vadd.f32 1.0, %v2700_v24  ;;  %v2603_v24 = vld [vmem:[#allocation10 + $0x80] sm:$0xf0]  ;;  %v2230_v59 = vor.u32 %v2583_v55, %v2229_v52 }
 0x614   :  { %v846_v29 = vmul.f32 0.5, %v842_v26  ;;  %v2314_v25 = vor.u32 %v2603_v24, %v2313_v23  ;;  %v2253_v26 = vld [vmem:[#allocation10 + $0x4c] sm:$0xf] }
 0x615   :  { %v847_v30 = vmul.f32 0.5, %v843_v28  ;;  %v2588_v28 = vld [vmem:[#allocation10 + $0x50] sm:$0xf] }
 0x616   :  { %v850_v32 = vmul.f32 %v846_v29, %v800_v63  ;;  %1166 = vmatpush.bf16.msra.mxu2 %v2278_v61  ;;  %v2321_v63 = vld [vmem:[#allocation10 + $0xa8] sm:$0xf]  ;;  %v2254_v29 = vor.u32 %v2589_v27, %v2253_v26 }
 0x617   :  { %v851_v34 = vmul.f32 %v847_v30, %v814_v2  ;;  %v2605_v2 = vld [vmem:[#allocation10 + $0xb0] sm:$0xf0]  ;;  %v2255_v30 = vld [vmem:[#allocation10 + $0x58] sm:$0xf0] }
 0x618   :  { %v852_v9 = vpack.c.bf16 %v850_v32, %v848_v31  ;;  %v2322_v4 = vor.u32 %v2605_v2, %v2321_v63  ;;  %v2258_v31 = vor.u32 %v2588_v28, %v2255_v30  ;;  %v2309_v32 = vld [vmem:[#allocation10 + $0x60] sm:$0xf]  ;;  %v2298_v63 = vor.u32 %v2599_v62, %v2297_v11 }
 0x619   :  { %v853_v35 = vpack.c.bf16 %v851_v34, %v849_v33  ;;  %v2602_v33 = vld [vmem:[#allocation10 + $0x68] sm:$0xf0]  ;;  %v2293_v2 = vld [vmem:[#allocation10] sm:$0xf] }
 0x61a   :  { %990 = vmatmul.bf16.vlgmr.msra.gmra.mxu0 %v852_v9  ;;  %1167 = vmatpush.bf16.msra.mxu2 %v2270_v0  ;;  %v2310_v34 = vor.u32 %v2602_v33, %v2309_v32  ;;  %v2245_v9 = vld [vmem:[#allocation10 + $0x34] sm:$0xf] }
 0x61b   :  { %1004 = vmatmul.bf16.vlgmr.msra.gmra.mxu1 %v853_v35  ;;  %1273 = vmatpush.bf16.msrb.mxu0 %v2322_v4  ;;  %v2587_v35 = vld [vmem:[#allocation10 + $0x3c] sm:$0xf0]  ;;  %v2598_v4 = vld [vmem:[#allocation10 + $0x8] sm:$0xf0] }
 0x61c   :  { %1183 = vmatpush.bf16.msra.mxu3 %v2258_v31  ;;  %v2294_v6 = vor.u32 %v2598_v4, %v2293_v2 }
 0x61e   :  { %1168 = vmatpush.bf16.msra.mxu2 %v2262_v20 }
 0x61f   :  { %1274 = vmatpush.bf16.msrb.mxu0 %v2318_v16 }
 0x622   :  { %1169 = vmatpush.bf16.msra.mxu2 %v2254_v29  ;;  %v1016_v29 = vld [vmem:[#allocation2 + $0x19] ss:$0 sm:$0xff] }
 0x623   :  { %1275 = vmatpush.bf16.msrb.mxu0 %v2314_v25  ;;  %v1015_v25 = vld [vmem:[#allocation2 + $0x18] ss:$0 sm:$0xff] }
 0x627   :  { %1276 = vmatpush.bf16.msrb.mxu0 %v2310_v34 }
 0x697   :  { %v991_v36 = vpop.f32.mrf.mxu0 }
 0x698   :  { %v1005_v37 = vpop.f32.mrf.mxu1 }
 0x699   :  { %v1006_v13 = vadd.f32 %v1005_v37, %v991_v36  ;;  %v2586_v36 = vld [vmem:[#allocation10 + $0x38] sm:$0xf]  ;;  %v2246_v37 = vor.u32 %v2587_v35, %v2245_v9 }
 0x69b   :  { %v1010_v39 = vadd.f32 %v1006_v13, %v3286_v3  ;;  %v2247_v13 = vld [vmem:[#allocation10 + $0x40] sm:$0xf0]  ;;  %1170 = vmatpush.bf16.msra.mxu2 %v2246_v37 }
 0x69d   :  { %v3310_v40 = vadd.f32 %v1012_v38, %v1010_v39  ;;  %v2305_v39 = vld [vmem:[#allocation10 + $0x48] sm:$0xf] }
 0x69f   :  { %1017 = vadd.xlane.f32.xlu0 %v3310_v40  ;;  %v993_v41 = vpop.f32.mrf.mxu0 }
 0x6a0   :  { %v1007_v42 = vpop.f32.mrf.mxu1 }
 0x6a1   :  { %v1008_v43 = vadd.f32 %v1007_v42, %v993_v41  ;;  %v2601_v41 = vld [vmem:[#allocation10 + $0x50] sm:$0xf0] }
 0x6a2   :  { %v2306_v42 = vor.u32 %v2601_v41, %v2305_v39  ;;  %v1079_v39 = vld [vmem:[#allocation2 + $0x22] ss:$8 sm:$0x3] }
 0x6a3   :  { %v1011_v44 = vadd.f32 %v1008_v43, %v3290_v5  ;;  %v2237_v43 = vld [vmem:[#allocation10 + $0x1c] sm:$0xf]  ;;  %v1081_v41 = vperm.slane %v1079_v39, 0 }
 0x6a4   :  { %1277 = vmatpush.bf16.msrb.mxu0 %v2306_v42  ;;  %v1082_v42 = vperm.slane %v1079_v39, 1 }
 0x6a5   :  { %v3314_v45 = vadd.f32 %v1012_v38, %v1011_v44  ;;  %v2250_v38 = vor.u32 %v2586_v36, %v2247_v13  ;;  %v2585_v44 = vld [vmem:[#allocation10 + $0x24] sm:$0xf0] }
 0x6a7   :  { %1019 = vadd.xlane.f32.xlu1 %v3314_v45  ;;  %1184 = vmatpush.bf16.msra.mxu3 %v2250_v38 }
 0x712   :  { %v1018_v46 = vpop.xlane.xlu0 %1017 }
 0x713   :  { %v1021_v47 = vmul.f32 %v1018_v46, %v3109_v8  ;;  %v2584_v46 = vld [vmem:[#allocation10 + $0x20] sm:$0xf] }
 0x715   :  { %v3319_v48 = vsub.f32 %v3310_v40, %v1021_v47  ;;  %v2238_v47 = vor.u32 %v2585_v44, %v2237_v43 }
 0x717   :  { %v1025_v3 = vmul.f32 %v3319_v48, %v3319_v48  ;;  %1171 = vmatpush.bf16.msra.mxu2 %v2238_v47 }
 0x719   :  { %1027 = vadd.xlane.f32.xlu2 %v1025_v3  ;;  %v2239_v3 = vld [vmem:[#allocation10 + $0x28] sm:$0xf0] }
 0x71a   :  { %v1020_v49 = vpop.xlane.xlu1 %1019 }
 0x71b   :  { %v1022_v50 = vmul.f32 %v1020_v49, %v3109_v8  ;;  %v2242_v49 = vor.u32 %v2584_v46, %v2239_v3  ;;  %1172 = vmatpush.bf16.msra.mxu2 %v2230_v59 }
 0x71d   :  { %v3325_v51 = vsub.f32 %v3314_v45, %v1022_v50  ;;  %v2301_v50 = vld [vmem:[#allocation10 + $0x30] sm:$0xf]  ;;  %1185 = vmatpush.bf16.msra.mxu3 %v2242_v49 }
 0x71f   :  { %v1026_v5 = vmul.f32 %v3325_v51, %v3325_v51 }
 0x721   :  { %1029 = vadd.xlane.f32.xlu0 %v1026_v5  ;;  %v2600_v5 = vld [vmem:[#allocation10 + $0x38] sm:$0xf0]  ;;  %1186 = vmatpush.bf16.msra.mxu3 %v2234_v60 }
 0x722   :  { %v2302_v54 = vor.u32 %v2600_v5, %v2301_v50 }
 0x724   :  { %1278 = vmatpush.bf16.msrb.mxu0 %v2302_v54 }
 0x728   :  { %1279 = vmatpush.bf16.msrb.mxu0 %v2298_v63 }
 0x72c   :  { %1280 = vmatpush.bf16.msrb.mxu0 %v2294_v6 }
 0x78c   :  { %v1028_v53 = vpop.xlane.xlu2 %1027 }
 0x78d   :  { %v1031_v58 = vmul.f32 %v1028_v53, %v3109_v8 }
 0x78f   :  { %v1033_v61 = vadd.f32 1e-05, %v1031_v58 }
 0x791   :  { %2701 = vrsqrt.f32 %v1033_v61  ;;  %vm1041_vm0 = vweird.f32 %v1033_v61 }
 0x794   :  { %v1030_v15 = vpop.xlane.xlu0 %1029 }
 0x795   :  { %v1032_v7 = vmul.f32 %v1030_v15, %v3109_v8 }
 0x797   :  { %v2702_v0 = vpop.eup %2701  ;;  %v1034_v10 = vadd.f32 1e-05, %v1032_v7 }
 0x798   :  { %v1036_v12 = vmul.f32 %v2702_v0, %v1033_v61  ;;  %vm1042_vm15 = vweird.f32 %v2702_v0 }
 0x799   :  { %2703 = vrsqrt.f32 %v1034_v10  ;;  %vm1043_vm1 = vmor %vm1041_vm0, %vm1042_vm15  ;;  %vm1051_vm3 = vweird.f32 %v1034_v10 }
 0x79a   :  { %v1037_v1 = vmul.f32 %v2702_v0, %v1036_v12 }
 0x79c   :  { %v1038_v14 = vmul.f32 0.5, %v1037_v1 }
 0x79e   :  { %v1039_v16 = vsub.f32 1.5, %v1038_v14 }
 0x79f   :  { %v2704_v17 = vpop.eup %2703 }
 0x7a0   :  { %v1040_v18 = vmul.f32 %v2702_v0, %v1039_v16  ;;  %v1046_v19 = vmul.f32 %v2704_v17, %v1034_v10  ;;  %vm1052_vm2 = vweird.f32 %v2704_v17 }
 0x7a1   :  { %vm1053_vm4 = vmor %vm1051_vm3, %vm1052_vm2 }
 0x7a2   :  { %v1044_v20 = vsel %vm1043_vm1, %v2702_v0, %v1040_v18  ;;  %v1047_v21 = vmul.f32 %v2704_v17, %v1046_v19 }
 0x7a3   :  { %v1055_v23 = vmul.f32 %v1044_v20, %v3319_v48 }
 0x7a4   :  { %v1048_v22 = vmul.f32 0.5, %v1047_v21 }
 0x7a5   :  { %v1057_v27 = vmul.f32 %v1055_v23, %v1015_v25 }
 0x7a6   :  { %v1049_v24 = vsub.f32 1.5, %v1048_v22 }
 0x7a7   :  { %v1059_v32 = vadd.f32 %v1057_v27, %v1016_v29  ;;  %v2612_v27 = vld [vmem:[#allocation11 + $0x30] sm:$0xff] }
 0x7a8   :  { %v1050_v26 = vmul.f32 %v2704_v17, %v1049_v24 }
 0x7a9   :  { %v1197_v9 = vpack.c.bf16 %v1059_v32, %v1059_v32 }
 0x7aa   :  { %v1054_v28 = vsel %vm1053_vm4, %v2704_v17, %v1050_v26  ;;  %v2613_v26 = vld [vmem:[#allocation11 + $0x38] sm:$0xff] }
 0x7ab   :  { %v1056_v30 = vmul.f32 %v1054_v28, %v3325_v51  ;;  %v1218_v48 = vunpack.c.l.b16 %v1197_v9  ;;  %v1215_v51 = vld [vmem:[#allocation2 + $0x1a] ss:$0 sm:$0xff]  ;;  %1465 = vmatpush.bf16.msrb.mxu1 %v2613_v26  ;;  %v2611_v28 = vld [vmem:[#allocation11 + $0x28] sm:$0xff] }
 0x7ad   :  { %v1058_v31 = vmul.f32 %v1056_v30, %v1015_v25 }
 0x7af   :  { %v1060_v33 = vadd.f32 %v1058_v31, %v1016_v29  ;;  %1466 = vmatpush.bf16.msrb.mxu1 %v2612_v27  ;;  %v2610_v29 = vld [vmem:[#allocation11 + $0x20] sm:$0xff]  ;;  %v2609_v31 = vld [vmem:[#allocation11 + $0x18] sm:$0xff] }
 0x7b0   :  { %v2402_v27 = vld [vmem:[#allocation13 + $0x58] sm:$0xf0] }
 0x7b1   :  { %v1061_v34 = vpack.c.bf16 %v1060_v33, %v1059_v32  ;;  %v1198_v35 = vpack.c.bf16 %v1060_v33, %v1060_v33 }
 0x7b3   :  { %1173 = vmatmul.bf16.vlgmr.msra.gmra.mxu2 %v1061_v34  ;;  %v1219_v36 = vunpack.c.l.b16 %v1198_v35  ;;  %1187 = vmatmul.bf16.vlgmr.msra.gmra.mxu3 %v1061_v34 }
 0x7b4   :  { %1467 = vmatpush.bf16.msrb.mxu1 %v2611_v28 }
 0x7b5   :  { %v1220_v37 = vrot.slane %v1219_v36, 7 }
 0x7b7   :  { %v1222_v13 = vsel %vm1221_vm5, %v1220_v37, %v1218_v48  ;;  %v2608_v37 = vld [vmem:[#allocation11 + $0x10] sm:$0xff] }
 0x7b8   :  { %v1223_v38 = vpack.c.b16 %v1222_v13, %v1222_v13  ;;  %1468 = vmatpush.bf16.msrb.mxu1 %v2610_v29  ;;  %v2607_v13 = vld [vmem:[#allocation11 + $0x8] sm:$0xff]  ;;  %v2392_v29 = vld [vmem:[#allocation13 + $0x40] sm:$0xf] }
 0x7ba   :  { %1281 = vmatmul.bf16.vlgmr.msrb.gmra.mxu0 %v1223_v38  ;;  %v2606_v38 = vld [vmem:[#allocation11] sm:$0xff] }
 0x7bc   :  { %1469 = vmatpush.bf16.msrb.mxu1 %v2609_v31  ;;  %v2622_v31 = vld [vmem:[#allocation13 + $0x44] sm:$0xf] }
 0x7c0   :  { %1470 = vmatpush.bf16.msrb.mxu1 %v2608_v37  ;;  %v2386_v37 = vld [vmem:[#allocation13 + $0x38] sm:$0xf0] }
 0x7c4   :  { %1471 = vmatpush.bf16.msrb.mxu1 %v2607_v13 }
 0x7c8   :  { %1472 = vmatpush.bf16.msrb.mxu1 %v2606_v38  ;;  %v2376_v38 = vld [vmem:[#allocation13 + $0x20] sm:$0xf] }
 0x836   :  { %v1174_v43 = vpop.f32.mrf.mxu2  ;;  %v1188_v44 = vpop.f32.mrf.mxu3 }
 0x837   :  { %v1175_v46 = vadd.f32 %v1174_v43, %v1081_v41  ;;  %v1189_v47 = vadd.f32 %v1188_v44, %v1082_v42  ;;  %v1282_v3 = vpop.f32.mrf.mxu0 }
 0x838   :  { %v1283_v49 = vadd.f32 %v1282_v3, %v1215_v51 }
 0x839   :  { %v1193_v50 = vpack.c.bf16 %v1175_v46, %v1175_v46  ;;  %v1195_v5 = vpack.c.bf16 %v1189_v47, %v1189_v47 }
 0x83a   :  { %v1286_v52 = vpack.c.bf16 %v1283_v49, %v1283_v49 }
 0x83b   :  { %v1357_v53 = vsel %vm518_vm7, %v1195_v5, 0  ;;  %1306 = vmatpush.bf16.xpose.msrb.mxu3 %v1193_v50 }
 0x83c   :  { %v1288_v54 = vrot.slane %v1286_v52, 3 }
 0x83e   :  { %v1292_v55 = vsel %vm1289_vm6, %v1286_v52, %v1288_v54  ;;  %v1176_v56 = vpop.f32.mrf.mxu2  ;;  %v1190_v57 = vpop.f32.mrf.mxu3 }
 0x83f   :  { %v2323_v58 = vpack.i.b16 %v1292_v55, %v1292_v55  ;;  %v1177_v59 = vadd.f32 %v1176_v56, %v1081_v41  ;;  %v1191_v60 = vadd.f32 %v1190_v57, %v1082_v42  ;;  %v1284_v61 = vpop.f32.mrf.mxu0  ;;  %v1295_v11 = vunpack.i.h.s16 %v1292_v55  ;;  %v1484_v55 = vld [vmem:[#allocation2 + $0x1b] ss:$0 sm:$0xff] }
 0x841   :  { %v1297_v62 = vperm.slane %v2323_v58, 0  ;;  %v1194_v63 = vpack.c.bf16 %v1177_v59, %v1177_v59  ;;  %v1196_v2 = vpack.c.bf16 %v1191_v60, %v1191_v60  ;;  %v1312_v15 = vpack.i.b16 %v1295_v11, %v1295_v11 }
 0x843   :  { %1366 = vmatpush.bf16.msra.mxu3 %v1357_v53  ;;  %v1376_v4 = vsel %vm518_vm7, %v1196_v2, 0  ;;  %1322 = vmatpush.bf16.xpose.msrb.mxu2 %v1194_v63  ;;  %v1313_v6 = vperm.slane %v1312_v15, 0  ;;  %vm1494_vm7 = vcmask 1041408  }
 0x844   :  { %1307 = vmatmul.bf16.vlgmr.msrb.gmra.mxu3 %v1297_v62  ;;  %1385 = vmatpush.bf16.msra.mxu0 %v1376_v4 }
 0x84a   :  { %1323 = vmatmul.bf16.vlgmr.msrb.gmra.mxu2 %v1313_v6 }
 0x8c7   :  { %v1308_v7 = vpop.f32.mrf.mxu3 }
 0x8c8   :  { %v1329_v0 = vsel %vm1328_vm9, %v1308_v7, -inf }
 0x8c9   :  { %1330 = vmax.xlane.f32.xlu1 %v1329_v0  ;;  %v2416_v0 = vld [vmem:[#allocation13 + $0x70] sm:$0xf] }
 0x8cd   :  { %v1324_v10 = vpop.f32.mrf.mxu2 }
 0x8ce   :  { %v1332_v1 = vsel %vm1328_vm9, %v1324_v10, -inf }
 0x8cf   :  { %v1310_v12 = vpop.f32.mrf.mxu3  ;;  %1333 = vmax.xlane.f32.xlu2 %v1332_v1 }
 0x8d0   :  { %v2628_v12 = vld [vmem:[#allocation13 + $0x74] sm:$0xf] }
 0x8d5   :  { %v1326_v14 = vpop.f32.mrf.mxu2 }
 0x8d6   :  { %v2418_v14 = vld [vmem:[#allocation13 + $0x78] sm:$0xf0] }
 0x93c   :  { %v1331_v16 = vpop.xlane.xlu1 %1330 }
 0x93d   :  { %v1335_v17 = vsub.f32 %v1308_v7, %v1331_v16  ;;  %v2421_v16 = vor.u32 %v2628_v12, %v2418_v14 }
 0x93f   :  { %v1337_v18 = vmul.f32 1.442695, %v1335_v17  ;;  %1663 = vmatpush.bf16.msrb.mxu3 %v2421_v16  ;;  %v2408_v17 = vld [vmem:[#allocation13 + $0x60] sm:$0xf] }
 0x941   :  { %2705 = vpow2.f32 %v1337_v18  ;;  %v2627_v18 = vld [vmem:[#allocation13 + $0x64] sm:$0xf0] }
 0x942   :  { %v1334_v19 = vpop.xlane.xlu2 %1333 }
 0x943   :  { %v1336_v20 = vsub.f32 %v1324_v10, %v1334_v19  ;;  %v2629_v10 = vld [vmem:[#allocation13 + $0x74] sm:$0xf0]  ;;  %v2626_v19 = vld [vmem:[#allocation13 + $0x64] sm:$0xf] }
 0x944   :  { %v2417_v1 = vor.u32 %v2629_v10, %v2416_v0 }
 0x945   :  { %v1339_v21 = vmul.f32 1.442695, %v1336_v20  ;;  %v2409_v20 = vor.u32 %v2627_v18, %v2408_v17 }
 0x946   :  { %1650 = vmatpush.bf16.msra.mxu2 %v2417_v1  ;;  %v1488_v1 = vld [vmem:[#allocation2 + $0x1d] ss:$0 sm:$0xff] }
 0x947   :  { %v2706_v22 = vpop.eup %2705  ;;  %2707 = vpow2.f32 %v1339_v21  ;;  %v2410_v21 = vld [vmem:[#allocation13 + $0x68] sm:$0xf0] }
 0x948   :  { %v1341_v23 = vsel %vm1328_vm9, %v2706_v22, 0.0 }
 0x949   :  { %1342 = vadd.xlane.f32.xlu0 %v1341_v23  ;;  %v2400_v23 = vld [vmem:[#allocation13 + $0x50] sm:$0xf] }
 0x94a   :  { %1651 = vmatpush.bf16.msra.mxu2 %v2409_v20 }
 0x94d   :  { %v2708_v24 = vpop.eup %2707 }
 0x94e   :  { %v1344_v25 = vsel %vm1328_vm9, %v2708_v24, 0.0 }
 0x94f   :  { %1345 = vadd.xlane.f32.xlu1 %v1344_v25  ;;  %v2624_v25 = vld [vmem:[#allocation13 + $0x54] sm:$0xf] }
 0x950   :  { %v2405_v28 = vor.u32 %v2624_v25, %v2402_v27  ;;  %v2636_v27 = vld [vmem:[#allocation14 + $0x30] sm:$0xff] }
 0x9bc   :  { %v1343_v30 = vpop.xlane.xlu0 %1342 }
 0x9bd   :  { %2709 = vrcp.f32 %v1343_v30  ;;  %v2623_v30 = vld [vmem:[#allocation13 + $0x44] sm:$0xf0] }
 0x9c2   :  { %v1346_v33 = vpop.xlane.xlu1 %1345 }
 0x9c3   :  { %v2710_v32 = vpop.eup %2709  ;;  %2711 = vrcp.f32 %v1346_v33  ;;  %v2394_v33 = vld [vmem:[#allocation13 + $0x48] sm:$0xf0] }
 0x9c4   :  { %v1349_v34 = vmul.f32 %v2710_v32, %v2706_v22  ;;  %v2413_v22 = vor.u32 %v2626_v19, %v2410_v21  ;;  %v2393_v32 = vor.u32 %v2623_v30, %v2392_v29  ;;  %v2634_v29 = vld [vmem:[#allocation14 + $0x20] sm:$0xff] }
 0x9c5   :  { %v2642_v30 = vld [vmem:[#allocation14 + $0x60] sm:$0xff] }
 0x9c6   :  { %v1351_v9 = vpack.c.bf16 %v1349_v34, %v1349_v34  ;;  %1664 = vmatpush.bf16.msrb.mxu3 %v2413_v22  ;;  %v2397_v34 = vor.u32 %v2622_v31, %v2394_v33  ;;  %v2633_v31 = vld [vmem:[#allocation14 + $0x18] sm:$0xff]  ;;  %v2632_v33 = vld [vmem:[#allocation14 + $0x10] sm:$0xff] }
 0x9c8   :  { %2324 = vmatmul.msk.bf16.vlgmr.msra.gmra.mxu3 %vm490_vm8, %v1351_v9  ;;  %v2384_v9 = vld [vmem:[#allocation13 + $0x30] sm:$0xf] }
 0x9c9   :  { %v2712_v35 = vpop.eup %2711 }
 0x9ca   :  { %v1350_v36 = vmul.f32 %v2712_v35, %v2708_v24  ;;  %v2625_v24 = vld [vmem:[#allocation13 + $0x54] sm:$0xf0]  ;;  %1665 = vmatpush.bf16.msrb.mxu3 %v2405_v28  ;;  %v2644_v28 = vld [vmem:[#allocation14 + $0x70] sm:$0xff] }
 0x9cb   :  { %v2401_v26 = vor.u32 %v2625_v24, %v2400_v23  ;;  %v2621_v35 = vld [vmem:[#allocation13 + $0x34] sm:$0xf0] }
 0x9cc   :  { %v1352_v48 = vpack.c.bf16 %v1350_v36, %v1350_v36  ;;  %v2620_v36 = vld [vmem:[#allocation13 + $0x34] sm:$0xf] }
 0x9cd   :  { %1652 = vmatpush.bf16.msra.mxu2 %v2401_v26  ;;  %v2389_v13 = vor.u32 %v2620_v36, %v2386_v37  ;;  %v2630_v36 = vld [vmem:[#allocation14] sm:$0xff]  ;;  %v1556_v37 = vld [vmem:[#allocation2 + $0x1e] ss:$8 sm:$0x3] }
 0x9ce   :  { %2325 = vmatmul.msk.bf16.vlgmr.msra.gmra.mxu0 %vm490_vm8, %v1352_v48  ;;  %1666 = vmatpush.bf16.msrb.mxu3 %v2397_v34  ;;  %v2385_v48 = vor.u32 %v2621_v35, %v2384_v9  ;;  %v2640_v34 = vld [vmem:[#allocation14 + $0x50] sm:$0xff]  ;;  %v2631_v9 = vld [vmem:[#allocation14 + $0x8] sm:$0xff] }
 0x9cf   :  { %v2639_v35 = vld [vmem:[#allocation14 + $0x48] sm:$0xff] }
 0x9d1   :  { %1653 = vmatpush.bf16.msra.mxu2 %v2393_v32  ;;  %v2641_v32 = vld [vmem:[#allocation14 + $0x58] sm:$0xff] }
 0x9d2   :  { %1667 = vmatpush.bf16.msrb.mxu3 %v2389_v13  ;;  %v1558_v13 = vperm.slane %v1556_v37, 0 }
 0x9d5   :  { %1654 = vmatpush.bf16.msra.mxu2 %v2385_v48  ;;  %v2638_v48 = vld [vmem:[#allocation14 + $0x40] sm:$0xff] }
 0xa4b   :  { %v1368_v39 = vpop.f32.mrf.mxu3  ;;  %v1387_v41 = vpop.f32.mrf.mxu0 }
 0xa4c   :  { %v1391_v42 = vpack.c.bf16 %v1368_v39, %v1368_v39  ;;  %v1392_v51 = vpack.c.bf16 %v1387_v41, %v1387_v41  ;;  %v2619_v39 = vld [vmem:[#allocation13 + $0x24] sm:$0xf0]  ;;  %v2618_v41 = vld [vmem:[#allocation13 + $0x24] sm:$0xf] }
 0xa4e   :  { %v1412_v43 = vunpack.c.l.b16 %v1392_v51  ;;  %v1411_v44 = vunpack.c.l.b16 %v1391_v42  ;;  %v2377_v42 = vor.u32 %v2619_v39, %v2376_v38  ;;  %v2378_v51 = vld [vmem:[#allocation13 + $0x28] sm:$0xf0]  ;;  %v1559_v38 = vperm.slane %v1556_v37, 1  ;;  %v2653_v39 = vld [vmem:[#allocation16 + $0x38] sm:$0xff] }
 0xa50   :  { %v1413_v46 = vrot.slane %v1412_v43, 7  ;;  %v2368_v43 = vld [vmem:[#allocation13 + $0x10] sm:$0xf]  ;;  %1655 = vmatpush.bf16.msra.mxu2 %v2377_v42 }
 0xa52   :  { %v1414_v47 = vsel %vm1221_vm5, %v1413_v46, %v1411_v44  ;;  %v2617_v44 = vld [vmem:[#allocation13 + $0x14] sm:$0xf0]  ;;  %v2381_v46 = vor.u32 %v2618_v41, %v2378_v51  ;;  %v2652_v41 = vld [vmem:[#allocation16 + $0x30] sm:$0xff] }
 0xa53   :  { %v1370_v3 = vpop.f32.mrf.mxu3  ;;  %v1415_v49 = vpack.c.b16 %v1414_v47, %v1414_v47  ;;  %v1389_v50 = vpop.f32.mrf.mxu0  ;;  %v2616_v47 = vld [vmem:[#allocation13 + $0x14] sm:$0xf] }
 0xa54   :  { %v2370_v3 = vld [vmem:[#allocation13 + $0x18] sm:$0xf0]  ;;  %1668 = vmatpush.bf16.msrb.mxu3 %v2381_v46 }
 0xa55   :  { %1473 = vmatmul.bf16.vlgmr.msrb.gmra.mxu1 %v1415_v49  ;;  %v2369_v49 = vor.u32 %v2617_v44, %v2368_v43  ;;  %v2373_v50 = vor.u32 %v2616_v47, %v2370_v3  ;;  %v2651_v3 = vld [vmem:[#allocation16 + $0x28] sm:$0xff] }
 0xa57   :  { %1656 = vmatpush.bf16.msra.mxu2 %v2369_v49 }
 0xa58   :  { %1669 = vmatpush.bf16.msrb.mxu3 %v2373_v50 }
 0xad2   :  { %v1474_v5 = vpop.f32.mrf.mxu1 }
 0xad3   :  { %v1479_v52 = vrot.slane %v1474_v5, 1  ;;  %v1482_v53 = vadd.f32 %v1474_v5, %v3310_v40  ;;  %v2360_v5 = vld [vmem:[#allocation13] sm:$0xf] }
 0xad5   :  { %v1483_v54 = vadd.f32 %v1479_v52, %v3314_v45  ;;  %v3347_v57 = vadd.f32 %v1484_v55, %v1482_v53  ;;  %v2615_v52 = vld [vmem:[#allocation13 + $0x4] sm:$0xf0]  ;;  %v2614_v53 = vld [vmem:[#allocation13 + $0x4] sm:$0xf] }
 0xad7   :  { %v3345_v56 = vadd.f32 %v1484_v55, %v1483_v54  ;;  %v2362_v54 = vld [vmem:[#allocation13 + $0x8] sm:$0xf0] }
 0xad9   :  { %v1491_v58 = vrot.slane %v3345_v56, 7 }
 0xada   :  { %v1476_v59 = vpop.f32.mrf.mxu1 }
 0xadb   :  { %v1492_v60 = vsel %vm1221_vm5, %v1491_v58, %v3347_v57  ;;  %v2361_v59 = vor.u32 %v2615_v52, %v2360_v5 }
 0xadc   :  { %v1495_v61 = vsel %vm1494_vm7, %v1492_v60, 0.0  ;;  %v2365_v60 = vor.u32 %v2614_v53, %v2362_v54  ;;  %v2650_v53 = vld [vmem:[#allocation16 + $0x20] sm:$0xff] }
 0xadd   :  { %1496 = vadd.xlane.f32.xlu2 %v1495_v61  ;;  %1657 = vmatpush.bf16.msra.mxu2 %v2361_v59 }
 0xade   :  { %1670 = vmatpush.bf16.msrb.mxu3 %v2365_v60 }
 0xae1   :  { %1934 = vmatpush.bf16.msrb.mxu2 %v2653_v39 }
 0xae5   :  { %1935 = vmatpush.bf16.msrb.mxu2 %v2652_v41 }
 0xae9   :  { %1936 = vmatpush.bf16.msrb.mxu2 %v2651_v3 }
 0xaed   :  { %1937 = vmatpush.bf16.msrb.mxu2 %v2650_v53 }
 0xb50   :  { %v1497_v11 = vpop.xlane.xlu2 %1496 }
 0xb51   :  { %v1498_v62 = vmul.f32 %v1497_v11, %v3109_v8  ;;  %v2637_v11 = vld [vmem:[#allocation14 + $0x38] sm:$0xff] }
 0xb52   :  { %1824 = vmatpush.bf16.msrb.mxu0 %v2637_v11 }
 0xb53   :  { %v1500_v40 = vrot.slane %v1498_v62, 1  ;;  %v3354_v45 = vsub.f32 %v3347_v57, %v1498_v62  ;;  %v2645_v62 = vld [vmem:[#allocation14 + $0x78] sm:$0xff] }
 0xb54   :  { %1837 = vmatpush.bf16.msra.mxu1 %v2645_v62 }
 0xb55   :  { %v3357_v63 = vsub.f32 %v3345_v56, %v1500_v40  ;;  %v1505_v4 = vmul.f32 %v3354_v45, %v3354_v45 }
 0xb56   :  { %1825 = vmatpush.bf16.msrb.mxu0 %v2636_v27 }
 0xb57   :  { %v1506_v2 = vmul.f32 %v3357_v63, %v3357_v63 }
 0xb58   :  { %1838 = vmatpush.bf16.msra.mxu1 %v2644_v28 }
 0xb59   :  { %v1509_v15 = vrot.slane %v1506_v2, 7 }
 0xb5b   :  { %v1510_v6 = vsel %vm1221_vm5, %v1509_v15, %v1505_v4 }
 0xb5c   :  { %v1512_v7 = vsel %vm1494_vm7, %v1510_v6, 0.0 }
 0xb5d   :  { %1513 = vadd.xlane.f32.xlu0 %v1512_v7 }
 0xbd0   :  { %v1514_v55 = vpop.xlane.xlu0 %1513 }
 0xbd1   :  { %v1515_v58 = vmul.f32 %v1514_v55, %v3109_v8  ;;  %v1487_v8 = vld [vmem:[#allocation2 + $0x1c] ss:$0 sm:$0xff] }
 0xbd3   :  { %v1516_v61 = vadd.f32 1e-05, %v1515_v58 }
 0xbd5   :  { %2713 = vrsqrt.f32 %v1516_v61  ;;  %vm1523_vm10 = vweird.f32 %v1516_v61 }
 0xbdb   :  { %v2714_v40 = vpop.eup %2713 }
 0xbdc   :  { %v1518_v2 = vmul.f32 %v2714_v40, %v1516_v61  ;;  %vm1524_vm8 = vweird.f32 %v2714_v40 }
 0xbdd   :  { %vm1525_vm11 = vmor %vm1523_vm10, %vm1524_vm8 }
 0xbde   :  { %v1519_v4 = vmul.f32 %v2714_v40, %v1518_v2 }
 0xbe0   :  { %v1520_v15 = vmul.f32 0.5, %v1519_v4 }
 0xbe2   :  { %v1521_v6 = vsub.f32 1.5, %v1520_v15 }
 0xbe4   :  { %v1522_v7 = vmul.f32 %v2714_v40, %v1521_v6 }
 0xbe6   :  { %v1526_v0 = vsel %vm1525_vm11, %v2714_v40, %v1522_v7 }
 0xbe7   :  { %v1528_v10 = vrot.slane %v1526_v0, 1  ;;  %v1531_v12 = vmul.f32 %v1526_v0, %v3354_v45  ;;  %v2635_v45 = vld [vmem:[#allocation14 + $0x28] sm:$0xff] }
 0xbe8   :  { %1826 = vmatpush.bf16.msrb.mxu0 %v2635_v45 }
 0xbe9   :  { %v1532_v14 = vmul.f32 %v1528_v10, %v3357_v63  ;;  %v1533_v16 = vmul.f32 %v1531_v12, %v1487_v8  ;;  %v2643_v63 = vld [vmem:[#allocation14 + $0x68] sm:$0xff]  ;;  %v2649_v10 = vld [vmem:[#allocation16 + $0x18] sm:$0xff]  ;;  %v2648_v12 = vld [vmem:[#allocation16 + $0x10] sm:$0xff] }
 0xbea   :  { %1839 = vmatpush.bf16.msra.mxu1 %v2643_v63  ;;  %1938 = vmatpush.bf16.msrb.mxu2 %v2649_v10 }
 0xbeb   :  { %v1534_v17 = vmul.f32 %v1532_v14, %v1487_v8  ;;  %v1535_v18 = vadd.f32 %v1533_v16, %v1488_v1  ;;  %v2646_v14 = vld [vmem:[#allocation16] sm:$0xff] }
 0xbec   :  { %1827 = vmatpush.bf16.msrb.mxu0 %v2634_v29 }
 0xbed   :  { %v1536_v19 = vadd.f32 %v1534_v17, %v1488_v1  ;;  %v1537_v20 = vpack.c.bf16 %v1535_v18, %v1535_v18  ;;  %v2647_v1 = vld [vmem:[#allocation16 + $0x8] sm:$0xff] }
 0xbee   :  { %1840 = vmatpush.bf16.msra.mxu1 %v2642_v30  ;;  %1939 = vmatpush.bf16.msrb.mxu2 %v2648_v12 }
 0xbef   :  { %v1538_v21 = vpack.c.bf16 %v1536_v19, %v1536_v19  ;;  %v1564_v23 = vunpack.c.l.b16 %v1537_v20  ;;  %v1856_v19 = vld [vmem:[#allocation2 + $0x1f] ss:$0 sm:$0xff] }
 0xbf0   :  { %1828 = vmatpush.bf16.msrb.mxu0 %v2633_v31 }
 0xbf1   :  { %v1565_v22 = vunpack.c.l.b16 %v1538_v21 }
 0xbf2   :  { %1841 = vmatpush.bf16.msra.mxu1 %v2641_v32  ;;  %1940 = vmatpush.bf16.msrb.mxu2 %v2647_v1  ;;  %v1877_v32 = vld [vmem:[#allocation2 + $0x30] ss:$0 sm:$0xff] }
 0xbf3   :  { %v1566_v24 = vrot.slane %v1565_v22, 7 }
 0xbf4   :  { %1829 = vmatpush.bf16.msrb.mxu0 %v2632_v33 }
 0xbf5   :  { %v1567_v25 = vsel %vm1221_vm5, %v1566_v24, %v1564_v23 }
 0xbf6   :  { %v1568_v26 = vpack.c.b16 %v1567_v25, %v1567_v25  ;;  %1842 = vmatpush.bf16.msra.mxu1 %v2640_v34  ;;  %1941 = vmatpush.bf16.msrb.mxu2 %v2646_v14 }
 0xbf8   :  { %1658 = vmatmul.bf16.vlgmr.msra.gmra.mxu2 %v1568_v26  ;;  %1671 = vmatmul.bf16.vlgmr.msrb.gmra.mxu3 %v1568_v26 }
 0xbf9   :  { %1830 = vmatpush.bf16.msrb.mxu0 %v2631_v9 }
 0xbfa   :  { %1843 = vmatpush.bf16.msra.mxu1 %v2639_v35 }
 0xbfd   :  { %1831 = vmatpush.bf16.msrb.mxu0 %v2630_v36 }
 0xbfe   :  { %1844 = vmatpush.bf16.msra.mxu1 %v2638_v48 }
 0xc7b   :  { %v1659_v42 = vpop.f32.mrf.mxu2  ;;  %v1672_v51 = vpop.f32.mrf.mxu3 }
 0xc7c   :  { %v1660_v43 = vadd.f32 %v1659_v42, %v1558_v13  ;;  %v1673_v44 = vadd.f32 %v1672_v51, %v1559_v38 }
 0xc7e   :  { %v1676_v46 = vmul.f32 %v1660_v43, %v1660_v43  ;;  %v1677_v47 = vmul.f32 %v1673_v44, %v1673_v44 }
 0xc80   :  { %v1678_v49 = vmul.f32 %v1676_v46, %v1660_v43  ;;  %v1679_v50 = vmul.f32 %v1677_v47, %v1673_v44 }
 0xc82   :  { %v1680_v5 = vmul.f32 0.044715, %v1678_v49  ;;  %v1681_v52 = vmul.f32 0.044715, %v1679_v50 }
 0xc83   :  { %v1661_v54 = vpop.f32.mrf.mxu2  ;;  %v1674_v55 = vpop.f32.mrf.mxu3 }
 0xc84   :  { %v1682_v58 = vadd.f32 %v1680_v5, %v1660_v43  ;;  %v1683_v59 = vadd.f32 %v1681_v52, %v1673_v44 }
 0xc86   :  { %v1684_v60 = vmul.f32 0.7978846, %v1682_v58  ;;  %v1685_v61 = vmul.f32 0.7978846, %v1683_v59 }
 0xc88   :  { %2715 = vtanh.f32 %v1684_v60 }
 0xc89   :  { %2717 = vtanh.f32 %v1685_v61 }
 0xc8e   :  { %v2716_v11 = vpop.eup %2715 }
 0xc8f   :  { %v2718_v62 = vpop.eup %2717  ;;  %v1688_v40 = vadd.f32 1.0, %v2716_v11 }
 0xc90   :  { %v1689_v2 = vadd.f32 1.0, %v2718_v62 }
 0xc91   :  { %v1690_v4 = vmul.f32 0.5, %v1688_v40 }
 0xc92   :  { %v1691_v15 = vmul.f32 0.5, %v1689_v2 }
 0xc93   :  { %v1692_v6 = vmul.f32 %v1690_v4, %v1660_v43 }
 0xc94   :  { %v1693_v7 = vmul.f32 %v1691_v15, %v1673_v44 }
 0xc95   :  { %v1694_v8 = vpack.c.bf16 %v1692_v6, %v1692_v6 }
 0xc96   :  { %v1695_v0 = vpack.c.bf16 %v1693_v7, %v1693_v7 }
 0xc97   :  { %1832 = vmatmul.bf16.vlgmr.msrb.gmra.mxu0 %v1694_v8 }
 0xc98   :  { %1845 = vmatmul.bf16.vlgmr.msra.gmra.mxu1 %v1695_v0 }
 0xd14   :  { %v1833_v16 = vpop.f32.mrf.mxu0 }
 0xd15   :  { %v1846_v17 = vpop.f32.mrf.mxu1 }
 0xd16   :  { %v1847_v18 = vadd.f32 %v1846_v17, %v1833_v16 }
 0xd18   :  { %v1851_v20 = vrot.slane %v1847_v18, 1  ;;  %v1854_v21 = vadd.f32 %v1847_v18, %v3347_v57 }
 0xd1a   :  { %v1855_v22 = vadd.f32 %v1851_v20, %v3345_v56  ;;  %v1857_v23 = vadd.f32 %v1856_v19, %v1854_v21 }
 0xd1c   :  { %v1858_v24 = vadd.f32 %v1856_v19, %v1855_v22  ;;  %v1835_v25 = vpop.f32.mrf.mxu0  ;;  %v1859_v27 = vpack.c.bf16 %v1857_v23, %v1857_v23 }
 0xd1d   :  { %v1848_v26 = vpop.f32.mrf.mxu1 }
 0xd1e   :  { %v1860_v28 = vpack.c.bf16 %v1858_v24, %v1858_v24  ;;  %v1880_v63 = vunpack.c.l.b16 %v1859_v27 }
 0xd20   :  { %v1881_v45 = vunpack.c.l.b16 %v1860_v28 }
 0xd22   :  { %v1882_v29 = vrot.slane %v1881_v45, 7 }
 0xd24   :  { %v1883_v30 = vsel %vm1221_vm5, %v1882_v29, %v1880_v63 }
 0xd25   :  { %v1884_v31 = vpack.c.b16 %v1883_v30, %v1883_v30 }
 0xd27   :  { %1942 = vmatmul.bf16.vlgmr.msrb.gmra.mxu2 %v1884_v31 }
 0xdaa   :  { %v1943_v56 = vpop.f32.mrf.mxu2 }
 0xdab   :  { %v1944_v57 = vadd.f32 %v1943_v56, %v1877_v32 }
 0xdad   :  { %1947 = vst [vmem:[#allocation17] sm:$0x3] %v1944_v57 }
 0xdae   :  { %1958 = dma.vmem_to_hbm [thread:$0]  %s1954_s22, 32, %s1956_s10, [#allocation4]  }
 0xdb2   :  { %v1945_v33 = vpop.f32.mrf.mxu2 }
 0xdb3   :  { %2969 = dma.done.wait [#allocation4], 32  }
 0xdb4   :  { %2970 = vsyncadd [#allocation4], 4294967264 }
 0xdb5   :  { %1963 = vsyncpa [#allocation3], 1 }
 0xdb6   :  { %1964 = vsyncpa [#allocation6], 1 }
 0xdb7   :  { %1965 = vsyncpa [#allocation9], 1 }
 0xdb8   :  { %1966 = vsyncpa [#allocation12], 1 }
 0xdb9   :  { %1967 = vsyncpa [#allocation15], 1 }
 0xdba   :  { %1968 = vsyncpa [#allocation4], 1 }

</bundles_post_ra>
